<compile_context>
chip_gen: v7x
topology: tpu7x:2x2x1
jax: 0.10.0
libtpu: 0.0.40
codegen_flags: <defaults>
</compile_context>

<pallas_src>
import functools
import math

import jax
import jax.numpy as jnp
from jax.experimental import pallas as pl
from jax.experimental.pallas import tpu as pltpu


# ----------------------------------------------------------------------------
# Hardware probes (safe fallbacks if the query APIs are unavailable).
# ----------------------------------------------------------------------------
def _vmem_capacity_bytes() -> int:
    try:
        return int(pltpu.get_tpu_info().vmem_capacity_bytes)
    except Exception:
        return 64 * 1024 * 1024  # conservative default (v7x per-TensorCore VMEM)


def _is_v6_or_newer() -> bool:
    """bf16 EUP/VPU and 256x256 MXU (v6e / v7x)."""
    try:
        kind = jax.devices()[0].device_kind.lower()
    except Exception:
        return False
    return any(tag in kind for tag in ("v6", "v7", "tpu7"))


_VMEM_CAP = _vmem_capacity_bytes()
_V6_PLUS = _is_v6_or_newer()


def _round_up(x, m):
    return (x + m - 1) // m * m


def _vmem_bytes_estimate(T, D, H, F, tq, act_bytes, out_bytes):
    """Rough per-kernel VMEM footprint (lane/sublane padded, worst-case buffering)."""
    dh = D // H
    lD = _round_up(D, 128)
    lF = _round_up(F, 128)
    lT = _round_up(T, 128)
    ldh = _round_up(dh, 128)
    rT = _round_up(T, 8)
    rq = _round_up(tq, 8)
    est = 0
    est += 2 * rT * lD * act_bytes                                   # x block
    est += 2 * rq * lD * out_bytes                                   # out block
    # weights (bf16) + biases / LN params (f32); x2 for worst-case double buffer
    w = 2 * (D * _round_up(3 * D, 128) + H * dh * lD + D * lF + F * lD)
    w += 4 * (_round_up(3 * D, 128) + 8 * lD + lF)
    est += 2 * w
    est += 3 * H * rT * ldh * 2                                      # q/k/v scratch
    est += 2 * H * rq * lT * 4                                       # scores + probs
    est += 2 * H * rq * ldh * 4                                      # q tile / o
    est += H * rq * lD * 4                                           # per-head attn
    est += rq * lF * 6                                               # FFN hidden
    est += 4 * rq * lD * 4                                           # x_q / x1 / xn2 / y
    return est


def _choose_tq(T, D, H, F, act_bytes, out_bytes):
    """Query-row tile: prefer 256 on v6e/v7x (256x256 MXU), 128 otherwise,
    subject to the detected VMEM budget; fall back to the whole sequence."""
    budget = _VMEM_CAP - (4 << 20)
    cands = [c for c in ((256, 128) if _V6_PLUS else (128,)) if T % c == 0]
    for c in cands:
        if _vmem_bytes_estimate(T, D, H, F, c, act_bytes, out_bytes) <= budget:
            return c
    if cands:
        return cands[-1]
    # TODO(synk): T not a multiple of 128 -> single whole-sequence tile (fine for
    # short T; large irregular T would need masking / a KV grid axis).
    return T


# ----------------------------------------------------------------------------
# Kernel
# ----------------------------------------------------------------------------
def _layer_norm(x, g, b, eps=1e-5):
    mu = jnp.mean(x, axis=-1, keepdims=True)
    var = jnp.mean(jnp.square(x - mu), axis=-1, keepdims=True)
    return (x - mu) * jax.lax.rsqrt(var + eps) * g + b


def encoder_layer_kernel(x_ref,
                         wqkv_ref, bqkv_ref, wo_ref, bo_ref,
                         g1_ref, b1_ref, g2_ref, b2_ref,
                         w1_ref, bf1_ref, w2_ref, bf2_ref,
                         gf_ref, bfn_ref,
                         out_ref,
                         q_s, k_s, v_s,
                         *, nhead, tq, apply_final_norm, bf16_exp):
    """One pre-norm encoder layer; one batch element, one query-row tile."""
    qi = pl.program_id(1)
    T, D = x_ref.shape[1], x_ref.shape[2]
    H = nhead
    dh = D // H

    # ---- once per batch element: LN + fused QKV projection + head split ----
    @pl.when(qi == 0)
    def _():
        x_full = x_ref[0].astype(jnp.float32)                        # (T, D)
        xn = _layer_norm(x_full, g1_ref[...], b1_ref[...]).astype(jnp.bfloat16)
        qkv = jnp.dot(xn, wqkv_ref[...],
                      preferred_element_type=jnp.float32) + bqkv_ref[...]
        qkv = qkv.astype(jnp.bfloat16)                               # (T, 3D)
        for h in range(H):                                           # head-major scratch
            q_s[h] = qkv[:, h * dh:(h + 1) * dh]
            k_s[h] = qkv[:, D + h * dh:D + (h + 1) * dh]
            v_s[h] = qkv[:, 2 * D + h * dh:2 * D + (h + 1) * dh]

    # ---- per query tile: attention + FFN ----
    q0 = pl.multiple_of(qi * tq, tq)
    x_q = x_ref[0, pl.ds(q0, tq), :].astype(jnp.float32)             # residual base
    q_h = q_s[:, pl.ds(q0, tq), :]                                   # (H, tq, dh) bf16, pre-scaled

    s = jnp.einsum('hqd,hkd->hqk', q_h, k_s[...],
                   preferred_element_type=jnp.float32)               # (H, tq, T)
    s = s - jnp.max(s, axis=-1, keepdims=True)
    p = jnp.exp(s.astype(jnp.bfloat16)) if bf16_exp else jnp.exp(s)
    denom = jnp.sum(p.astype(jnp.float32), axis=-1, keepdims=True)   # (H, tq, 1) f32
    o = jnp.einsum('hqk,hkd->hqd', p.astype(jnp.bfloat16), v_s[...],
                   preferred_element_type=jnp.float32)               # (H, tq, dh)
    o = o * pl.reciprocal(denom, approx=True)                        # deferred softmax norm
    # Head merge folded into the output projection: wo is (H, dh, D).
    attn = jnp.einsum('hqd,hde->hqe', o.astype(jnp.bfloat16), wo_ref[...],
                      preferred_element_type=jnp.float32)            # (H, tq, D)
    attn = jnp.sum(attn, axis=0) + bo_ref[...]                       # (tq, D)
    x1 = x_q + attn                                                  # dropout = identity

    # ---- feed-forward sub-block (pre-norm) ----
    xn2 = _layer_norm(x1, g2_ref[...], b2_ref[...]).astype(jnp.bfloat16)
    h1 = jnp.dot(xn2, w1_ref[...], preferred_element_type=jnp.float32) + bf1_ref[...]
    h1 = jnp.maximum(h1, 0.0).astype(jnp.bfloat16)                   # ReLU
    h2 = jnp.dot(h1, w2_ref[...], preferred_element_type=jnp.float32) + bf2_ref[...]
    y = x1 + h2

    if apply_final_norm:                                             # fused encoder-final LN
        y = _layer_norm(y, gf_ref[...], bfn_ref[...])
    out_ref[0] = y.astype(out_ref.dtype)


# ----------------------------------------------------------------------------
# Wrapper
# ----------------------------------------------------------------------------
def _const_spec(shape, single_buffer):
    """Full-array spec with a constant block index (weights / biases / gammas)."""
    nd = len(shape)
    index_map = lambda *_args, _nd=nd: (0,) * _nd
    if single_buffer and hasattr(pl, "Buffered"):
        try:
            # Block index never changes across the grid -> one VMEM buffer suffices.
            return pl.BlockSpec(shape, index_map, pipeline_mode=pl.Buffered(1))
        except TypeError:
            pass
    return pl.BlockSpec(shape, index_map)


_single_buffer_ok = True  # flipped off if this jax/Mosaic rejects pl.Buffered(1)


def run_encoder_layer(x_ntd, p, g_final, b_final, *, nhead,
                      apply_final_norm, out_dtype):
    """x_ntd: (N, T, D); p: dict of pre-transposed weights (see init_params)."""
    global _single_buffer_ok
    N, T, D = x_ntd.shape
    H = nhead
    dh = D // H
    F = p["w1"].shape[1]
    act_bytes = x_ntd.dtype.itemsize
    out_bytes = jnp.dtype(out_dtype).itemsize

    tq = _choose_tq(T, D, H, F, act_bytes, out_bytes)
    num_qt = T // tq
    est = _vmem_bytes_estimate(T, D, H, F, tq, act_bytes, out_bytes)
    vmem_limit = int(min(_VMEM_CAP - (2 << 20), max(2 * est, 32 << 20)))

    weights = (p["wqkv"], p["bqkv"], p["wo"], p["bo"],
               p["g1"], p["b1"], p["g2"], p["b2"],
               p["w1"], p["bf1"], p["w2"], p["bf2"],
               g_final, b_final)

    def build_and_run(single_buffer):
        in_specs = [pl.BlockSpec((1, T, D), lambda n, qi: (n, 0, 0))]
        in_specs += [_const_spec(w.shape, single_buffer) for w in weights]
        return pl.pallas_call(
            functools.partial(encoder_layer_kernel, nhead=H, tq=tq,
                              apply_final_norm=apply_final_norm,
                              bf16_exp=_V6_PLUS),
            out_shape=jax.ShapeDtypeStruct((N, T, D), out_dtype),
            grid_spec=pltpu.PrefetchScalarGridSpec(
                num_scalar_prefetch=0,
                grid=(N, num_qt),
                in_specs=in_specs,
                out_specs=pl.BlockSpec((1, tq, D), lambda n, qi: (n, qi, 0)),
                scratch_shapes=[pltpu.VMEM((H, T, dh), jnp.bfloat16),
                                pltpu.VMEM((H, T, dh), jnp.bfloat16),
                                pltpu.VMEM((H, T, dh), jnp.bfloat16)],
            ),
            compiler_params=pltpu.CompilerParams(
                dimension_semantics=("parallel", "arbitrary"),
                vmem_limit_bytes=vmem_limit,
            ),
        )(x_ntd, *weights)

    if _single_buffer_ok:
        try:
            return build_and_run(True)
        except Exception:
            # TODO(synk): pl.Buffered(1) pipeline_mode rejected by this jax/Mosaic
            # version; fall back to default (double-buffered) weight blocks.
            _single_buffer_ok = False
    return build_and_run(False)


def init_params(key, d_model, nhead, num_layers, dim_feedforward):
    """Synthetic parameters stored in kernel-friendly layouts:
      - wqkv: (D, 3D) bf16 == in_proj_weight.T with the Q-third pre-scaled by 1/sqrt(dh)
      - bqkv: (1, 3D) f32  == in_proj_bias (Q-third must also be pre-scaled if nonzero)
      - wo:   (H, dh, D) bf16 == out_proj.weight.T reshaped head-major
      - w1/w2: feed-forward Linear weights transposed (x @ W layout), bf16
    """
    D, F, H = d_model, dim_feedforward, nhead
    dh = D // H
    scale = 1.0 / math.sqrt(dh)

    def w(kk, shape):
        return 0.02 * jax.random.normal(kk, shape, jnp.float32)

    params = {"layers": []}
    for li in range(num_layers):
        k = jax.random.fold_in(key, li)
        ks = jax.random.split(k, 6)
        wq = w(ks[0], (D, D)) * scale          # fold the attention scale into Q proj
        wk = w(ks[1], (D, D))
        wv = w(ks[2], (D, D))
        layer = {
            "wqkv": jnp.concatenate([wq, wk, wv], axis=1).astype(jnp.bfloat16),
            "bqkv": jnp.zeros((1, 3 * D), jnp.float32),
            "wo": w(ks[3], (D, D)).astype(jnp.bfloat16).reshape(H, dh, D),
            "bo": jnp.zeros((1, D), jnp.float32),
            "g1": jnp.ones((1, D), jnp.float32), "b1": jnp.zeros((1, D), jnp.float32),
            "g2": jnp.ones((1, D), jnp.float32), "b2": jnp.zeros((1, D), jnp.float32),
            "w1": w(ks[4], (D, F)).astype(jnp.bfloat16),
            "bf1": jnp.zeros((1, F), jnp.float32),
            "w2": w(ks[5], (F, D)).astype(jnp.bfloat16),
            "bf2": jnp.zeros((1, D), jnp.float32),
        }
        params["layers"].append(layer)
    params["g_final"] = jnp.ones((1, D), jnp.float32)
    params["b_final"] = jnp.zeros((1, D), jnp.float32)
    return params


def transformer_encoder(src_tnd, params, nhead):
    """src_tnd: (T, N, d_model), seq-first like the PyTorch module."""
    T, N, D = src_tnd.shape
    assert D % nhead == 0, (D, nhead)
    x = jnp.transpose(src_tnd, (1, 0, 2))        # (N, T, D), once before the layer loop
    n_layers = len(params["layers"])
    for li, lp in enumerate(params["layers"]):
        last = li == n_layers - 1
        x = run_encoder_layer(
            x, lp, params["g_final"], params["b_final"],
            nhead=nhead, apply_final_norm=last,
            # Inter-layer activations carried in bf16; final output in f32.
            out_dtype=jnp.float32 if last else jnp.bfloat16)
    return jnp.transpose(x, (1, 0, 2))           # back to (T, N, d_model)


if __name__ == "__main__":
    # Small shapes consistent with the module's forward: src is (T, N, d_model).
    T, N, d_model = 8, 2, 32
    nhead, num_layers, dim_feedforward = 4, 2, 64

    key = jax.random.PRNGKey(0)
    k_src, k_par = jax.random.split(key)
    src = jax.random.normal(k_src, (T, N, d_model), jnp.float32)
    params = init_params(k_par, d_model, nhead, num_layers, dim_feedforward)

    out = transformer_encoder(src, params, nhead)
    out = jax.block_until_ready(out)
    assert out.shape == (T, N, d_model), out.shape
    assert bool(jnp.all(jnp.isfinite(out)))
    print("KERNEL_OK")
</pallas_src>

<mosaic_0001>
module attributes {stable_mosaic.version = 11 : i64} {
  func.func @encoder_layer_kernel(%arg0: i32, %arg1: i32, %arg2: memref<1x8x32xf32, #tpu.memory_space<vmem>>, %arg3: memref<32x96xbf16, #tpu.memory_space<vmem>>, %arg4: memref<1x96xf32, #tpu.memory_space<vmem>>, %arg5: memref<4x8x32xbf16, #tpu.memory_space<vmem>>, %arg6: memref<1x32xf32, #tpu.memory_space<vmem>>, %arg7: memref<1x32xf32, #tpu.memory_space<vmem>>, %arg8: memref<1x32xf32, #tpu.memory_space<vmem>>, %arg9: memref<1x32xf32, #tpu.memory_space<vmem>>, %arg10: memref<1x32xf32, #tpu.memory_space<vmem>>, %arg11: memref<32x64xbf16, #tpu.memory_space<vmem>>, %arg12: memref<1x64xf32, #tpu.memory_space<vmem>>, %arg13: memref<64x32xbf16, #tpu.memory_space<vmem>>, %arg14: memref<1x32xf32, #tpu.memory_space<vmem>>, %arg15: memref<1x32xf32, #tpu.memory_space<vmem>>, %arg16: memref<1x32xf32, #tpu.memory_space<vmem>>, %arg17: memref<1x8x32xbf16, #tpu.memory_space<vmem>>, %arg18: memref<4x8x8xbf16, #tpu.memory_space<vmem>>, %arg19: memref<4x8x8xbf16, #tpu.memory_space<vmem>>, %arg20: memref<4x8x8xbf16, #tpu.memory_space<vmem>>) attributes {dimension_semantics = [#tpu.dimension_semantics<parallel>, #tpu.dimension_semantics<arbitrary>], iteration_bounds = array<i64: 2, 1>, scalar_prefetch = 0 : i64, scratch_operands = 3 : i64, tpu.core_type = #tpu.core_type<tc>, window_params = [{transform_indices = @transform_0, window_bounds = array<i64: 1, 8, 32>}, {pipeline_mode = #tpu.pipeline_mode<synchronous>, transform_indices = @transform_1, window_bounds = array<i64: 32, 96>}, {pipeline_mode = #tpu.pipeline_mode<synchronous>, transform_indices = @transform_2, window_bounds = array<i64: 1, 96>}, {pipeline_mode = #tpu.pipeline_mode<synchronous>, transform_indices = @transform_3, window_bounds = array<i64: 4, 8, 32>}, {pipeline_mode = #tpu.pipeline_mode<synchronous>, transform_indices = @transform_4, window_bounds = array<i64: 1, 32>}, {pipeline_mode = #tpu.pipeline_mode<synchronous>, transform_indices = @transform_5, window_bounds = array<i64: 1, 32>}, {pipeline_mode = #tpu.pipeline_mode<synchronous>, transform_indices = @transform_6, window_bounds = array<i64: 1, 32>}, {pipeline_mode = #tpu.pipeline_mode<synchronous>, transform_indices = @transform_7, window_bounds = array<i64: 1, 32>}, {pipeline_mode = #tpu.pipeline_mode<synchronous>, transform_indices = @transform_8, window_bounds = array<i64: 1, 32>}, {pipeline_mode = #tpu.pipeline_mode<synchronous>, transform_indices = @transform_9, window_bounds = array<i64: 32, 64>}, {pipeline_mode = #tpu.pipeline_mode<synchronous>, transform_indices = @transform_10, window_bounds = array<i64: 1, 64>}, {pipeline_mode = #tpu.pipeline_mode<synchronous>, transform_indices = @transform_11, window_bounds = array<i64: 64, 32>}, {pipeline_mode = #tpu.pipeline_mode<synchronous>, transform_indices = @transform_12, window_bounds = array<i64: 1, 32>}, {pipeline_mode = #tpu.pipeline_mode<synchronous>, transform_indices = @transform_13, window_bounds = array<i64: 1, 32>}, {pipeline_mode = #tpu.pipeline_mode<synchronous>, transform_indices = @transform_14, window_bounds = array<i64: 1, 32>}, {transform_indices = @transform_15, window_bounds = array<i64: 1, 8, 32>}]} {
    %c0_i32 = arith.constant 0 : i32
    %0 = arith.cmpi eq, %arg1, %c0_i32 : i32
    %1 = arith.extui %0 : i1 to i32
    %c0_i32_0 = arith.constant 0 : i32
    %2 = arith.cmpi ne, %1, %c0_i32_0 : i32
    scf.if %2 {
      %c0_43 = arith.constant 0 : index
      %c0_44 = arith.constant 0 : index
      %c0_45 = arith.constant 0 : index
      %76 = vector.load %arg2[%c0_43, %c0_44, %c0_45] : memref<1x8x32xf32, #tpu.memory_space<vmem>>, vector<1x8x32xf32>
      %77 = vector.shape_cast %76 : vector<1x8x32xf32> to vector<8x32xf32>
      %c0_46 = arith.constant 0 : index
      %c0_47 = arith.constant 0 : index
      %78 = vector.load %arg7[%c0_46, %c0_47] : memref<1x32xf32, #tpu.memory_space<vmem>>, vector<1x32xf32>
      %c0_48 = arith.constant 0 : index
      %c0_49 = arith.constant 0 : index
      %79 = vector.load %arg8[%c0_48, %c0_49] : memref<1x32xf32, #tpu.memory_space<vmem>>, vector<1x32xf32>
      %cst_50 = arith.constant dense<0.000000e+00> : vector<8xf32>
      %80 = vector.multi_reduction <add>, %77, %cst_50 [1] : vector<8x32xf32> to vector<8xf32>
      %81 = vector.shape_cast %80 : vector<8xf32> to vector<8x1xf32>
      %cst_51 = arith.constant 3.200000e+01 : f32
      %82 = vector.broadcast %cst_51 : f32 to vector<8x1xf32>
      %83 = arith.divf %81, %82 : vector<8x1xf32>
      %84 = vector.broadcast %83 : vector<8x1xf32> to vector<8x32xf32>
      %85 = arith.subf %77, %84 : vector<8x32xf32>
      %86 = arith.mulf %85, %85 : vector<8x32xf32>
      %cst_52 = arith.constant dense<0.000000e+00> : vector<8xf32>
      %87 = vector.multi_reduction <add>, %86, %cst_52 [1] : vector<8x32xf32> to vector<8xf32>
      %88 = vector.shape_cast %87 : vector<8xf32> to vector<8x1xf32>
      %cst_53 = arith.constant 3.200000e+01 : f32
      %89 = vector.broadcast %cst_53 : f32 to vector<8x1xf32>
      %90 = arith.divf %88, %89 : vector<8x1xf32>
      %91 = vector.broadcast %83 : vector<8x1xf32> to vector<8x32xf32>
      %92 = arith.subf %77, %91 : vector<8x32xf32>
      %cst_54 = arith.constant 9.99999974E-6 : f32
      %93 = vector.broadcast %cst_54 : f32 to vector<8x1xf32>
      %94 = arith.addf %90, %93 : vector<8x1xf32>
      %95 = math.rsqrt %94 : vector<8x1xf32>
      %96 = vector.broadcast %95 : vector<8x1xf32> to vector<8x32xf32>
      %97 = arith.mulf %92, %96 : vector<8x32xf32>
      %98 = vector.broadcast %78 : vector<1x32xf32> to vector<8x32xf32>
      %99 = arith.mulf %97, %98 : vector<8x32xf32>
      %100 = vector.broadcast %79 : vector<1x32xf32> to vector<8x32xf32>
      %101 = arith.addf %99, %100 : vector<8x32xf32>
      %102 = arith.truncf %101 : vector<8x32xf32> to vector<8x32xbf16>
      %c0_55 = arith.constant 0 : index
      %c0_56 = arith.constant 0 : index
      %103 = vector.load %arg3[%c0_55, %c0_56] : memref<32x96xbf16, #tpu.memory_space<vmem>>, vector<32x96xbf16>
      %cst_57 = arith.constant dense<0.000000e+00> : vector<8x96xf32>
      %104 = tpu.matmul %102, %103, %cst_57 {dimension_numbers = #tpu.dot_dimension_numbers<[1], [0], [0], [1], [0, 0, 1, 1], [], []>} : vector<8x32xbf16>, vector<32x96xbf16>, vector<8x96xf32> -> vector<8x96xf32>
      %c0_58 = arith.constant 0 : index
      %c0_59 = arith.constant 0 : index
      %105 = vector.load %arg4[%c0_58, %c0_59] : memref<1x96xf32, #tpu.memory_space<vmem>>, vector<1x96xf32>
      %106 = vector.broadcast %105 : vector<1x96xf32> to vector<8x96xf32>
      %107 = arith.addf %104, %106 : vector<8x96xf32>
      %108 = arith.truncf %107 : vector<8x96xf32> to vector<8x96xbf16>
      %109 = vector.extract_strided_slice %108 {offsets = [0, 0], sizes = [8, 8], strides = [1, 1]} : vector<8x96xbf16> to vector<8x8xbf16>
      %c0_60 = arith.constant 0 : index
      %c0_61 = arith.constant 0 : index
      %c0_62 = arith.constant 0 : index
      %110 = vector.load %arg18[%c0_60, %c0_61, %c0_62] : memref<4x8x8xbf16, #tpu.memory_space<vmem>>, vector<1x8x8xbf16>
      %111 = vector.shape_cast %110 : vector<1x8x8xbf16> to vector<8x8xbf16>
      %112 = vector.shape_cast %109 : vector<8x8xbf16> to vector<1x8x8xbf16>
      tpu.vector_store %arg18[%c0_60, %c0_61, %c0_62], %112 {strides = array<i32>} : memref<4x8x8xbf16, #tpu.memory_space<vmem>>, vector<1x8x8xbf16>,
      %113 = vector.extract_strided_slice %108 {offsets = [0, 32], sizes = [8, 8], strides = [1, 1]} : vector<8x96xbf16> to vector<8x8xbf16>
      %c0_63 = arith.constant 0 : index
      %c0_64 = arith.constant 0 : index
      %c0_65 = arith.constant 0 : index
      %114 = vector.load %arg19[%c0_63, %c0_64, %c0_65] : memref<4x8x8xbf16, #tpu.memory_space<vmem>>, vector<1x8x8xbf16>
      %115 = vector.shape_cast %114 : vector<1x8x8xbf16> to vector<8x8xbf16>
      %116 = vector.shape_cast %113 : vector<8x8xbf16> to vector<1x8x8xbf16>
      tpu.vector_store %arg19[%c0_63, %c0_64, %c0_65], %116 {strides = array<i32>} : memref<4x8x8xbf16, #tpu.memory_space<vmem>>, vector<1x8x8xbf16>,
      %117 = vector.extract_strided_slice %108 {offsets = [0, 64], sizes = [8, 8], strides = [1, 1]} : vector<8x96xbf16> to vector<8x8xbf16>
      %c0_66 = arith.constant 0 : index
      %c0_67 = arith.constant 0 : index
      %c0_68 = arith.constant 0 : index
      %118 = vector.load %arg20[%c0_66, %c0_67, %c0_68] : memref<4x8x8xbf16, #tpu.memory_space<vmem>>, vector<1x8x8xbf16>
      %119 = vector.shape_cast %118 : vector<1x8x8xbf16> to vector<8x8xbf16>
      %120 = vector.shape_cast %117 : vector<8x8xbf16> to vector<1x8x8xbf16>
      tpu.vector_store %arg20[%c0_66, %c0_67, %c0_68], %120 {strides = array<i32>} : memref<4x8x8xbf16, #tpu.memory_space<vmem>>, vector<1x8x8xbf16>,
      %121 = vector.extract_strided_slice %108 {offsets = [0, 8], sizes = [8, 8], strides = [1, 1]} : vector<8x96xbf16> to vector<8x8xbf16>
      %c1 = arith.constant 1 : index
      %c0_69 = arith.constant 0 : index
      %c0_70 = arith.constant 0 : index
      %122 = vector.load %arg18[%c1, %c0_69, %c0_70] : memref<4x8x8xbf16, #tpu.memory_space<vmem>>, vector<1x8x8xbf16>
      %123 = vector.shape_cast %122 : vector<1x8x8xbf16> to vector<8x8xbf16>
      %124 = vector.shape_cast %121 : vector<8x8xbf16> to vector<1x8x8xbf16>
      tpu.vector_store %arg18[%c1, %c0_69, %c0_70], %124 {strides = array<i32>} : memref<4x8x8xbf16, #tpu.memory_space<vmem>>, vector<1x8x8xbf16>,
      %125 = vector.extract_strided_slice %108 {offsets = [0, 40], sizes = [8, 8], strides = [1, 1]} : vector<8x96xbf16> to vector<8x8xbf16>
      %c1_71 = arith.constant 1 : index
      %c0_72 = arith.constant 0 : index
      %c0_73 = arith.constant 0 : index
      %126 = vector.load %arg19[%c1_71, %c0_72, %c0_73] : memref<4x8x8xbf16, #tpu.memory_space<vmem>>, vector<1x8x8xbf16>
      %127 = vector.shape_cast %126 : vector<1x8x8xbf16> to vector<8x8xbf16>
      %128 = vector.shape_cast %125 : vector<8x8xbf16> to vector<1x8x8xbf16>
      tpu.vector_store %arg19[%c1_71, %c0_72, %c0_73], %128 {strides = array<i32>} : memref<4x8x8xbf16, #tpu.memory_space<vmem>>, vector<1x8x8xbf16>,
      %129 = vector.extract_strided_slice %108 {offsets = [0, 72], sizes = [8, 8], strides = [1, 1]} : vector<8x96xbf16> to vector<8x8xbf16>
      %c1_74 = arith.constant 1 : index
      %c0_75 = arith.constant 0 : index
      %c0_76 = arith.constant 0 : index
      %130 = vector.load %arg20[%c1_74, %c0_75, %c0_76] : memref<4x8x8xbf16, #tpu.memory_space<vmem>>, vector<1x8x8xbf16>
      %131 = vector.shape_cast %130 : vector<1x8x8xbf16> to vector<8x8xbf16>
      %132 = vector.shape_cast %129 : vector<8x8xbf16> to vector<1x8x8xbf16>
      tpu.vector_store %arg20[%c1_74, %c0_75, %c0_76], %132 {strides = array<i32>} : memref<4x8x8xbf16, #tpu.memory_space<vmem>>, vector<1x8x8xbf16>,
      %133 = vector.extract_strided_slice %108 {offsets = [0, 16], sizes = [8, 8], strides = [1, 1]} : vector<8x96xbf16> to vector<8x8xbf16>
      %c2 = arith.constant 2 : index
      %c0_77 = arith.constant 0 : index
      %c0_78 = arith.constant 0 : index
      %134 = vector.load %arg18[%c2, %c0_77, %c0_78] : memref<4x8x8xbf16, #tpu.memory_space<vmem>>, vector<1x8x8xbf16>
      %135 = vector.shape_cast %134 : vector<1x8x8xbf16> to vector<8x8xbf16>
      %136 = vector.shape_cast %133 : vector<8x8xbf16> to vector<1x8x8xbf16>
      tpu.vector_store %arg18[%c2, %c0_77, %c0_78], %136 {strides = array<i32>} : memref<4x8x8xbf16, #tpu.memory_space<vmem>>, vector<1x8x8xbf16>,
      %137 = vector.extract_strided_slice %108 {offsets = [0, 48], sizes = [8, 8], strides = [1, 1]} : vector<8x96xbf16> to vector<8x8xbf16>
      %c2_79 = arith.constant 2 : index
      %c0_80 = arith.constant 0 : index
      %c0_81 = arith.constant 0 : index
      %138 = vector.load %arg19[%c2_79, %c0_80, %c0_81] : memref<4x8x8xbf16, #tpu.memory_space<vmem>>, vector<1x8x8xbf16>
      %139 = vector.shape_cast %138 : vector<1x8x8xbf16> to vector<8x8xbf16>
      %140 = vector.shape_cast %137 : vector<8x8xbf16> to vector<1x8x8xbf16>
      tpu.vector_store %arg19[%c2_79, %c0_80, %c0_81], %140 {strides = array<i32>} : memref<4x8x8xbf16, #tpu.memory_space<vmem>>, vector<1x8x8xbf16>,
      %141 = vector.extract_strided_slice %108 {offsets = [0, 80], sizes = [8, 8], strides = [1, 1]} : vector<8x96xbf16> to vector<8x8xbf16>
      %c2_82 = arith.constant 2 : index
      %c0_83 = arith.constant 0 : index
      %c0_84 = arith.constant 0 : index
      %142 = vector.load %arg20[%c2_82, %c0_83, %c0_84] : memref<4x8x8xbf16, #tpu.memory_space<vmem>>, vector<1x8x8xbf16>
      %143 = vector.shape_cast %142 : vector<1x8x8xbf16> to vector<8x8xbf16>
      %144 = vector.shape_cast %141 : vector<8x8xbf16> to vector<1x8x8xbf16>
      tpu.vector_store %arg20[%c2_82, %c0_83, %c0_84], %144 {strides = array<i32>} : memref<4x8x8xbf16, #tpu.memory_space<vmem>>, vector<1x8x8xbf16>,
      %145 = vector.extract_strided_slice %108 {offsets = [0, 24], sizes = [8, 8], strides = [1, 1]} : vector<8x96xbf16> to vector<8x8xbf16>
      %c3 = arith.constant 3 : index
      %c0_85 = arith.constant 0 : index
      %c0_86 = arith.constant 0 : index
      %146 = vector.load %arg18[%c3, %c0_85, %c0_86] : memref<4x8x8xbf16, #tpu.memory_space<vmem>>, vector<1x8x8xbf16>
      %147 = vector.shape_cast %146 : vector<1x8x8xbf16> to vector<8x8xbf16>
      %148 = vector.shape_cast %145 : vector<8x8xbf16> to vector<1x8x8xbf16>
      tpu.vector_store %arg18[%c3, %c0_85, %c0_86], %148 {strides = array<i32>} : memref<4x8x8xbf16, #tpu.memory_space<vmem>>, vector<1x8x8xbf16>,
      %149 = vector.extract_strided_slice %108 {offsets = [0, 56], sizes = [8, 8], strides = [1, 1]} : vector<8x96xbf16> to vector<8x8xbf16>
      %c3_87 = arith.constant 3 : index
      %c0_88 = arith.constant 0 : index
      %c0_89 = arith.constant 0 : index
      %150 = vector.load %arg19[%c3_87, %c0_88, %c0_89] : memref<4x8x8xbf16, #tpu.memory_space<vmem>>, vector<1x8x8xbf16>
      %151 = vector.shape_cast %150 : vector<1x8x8xbf16> to vector<8x8xbf16>
      %152 = vector.shape_cast %149 : vector<8x8xbf16> to vector<1x8x8xbf16>
      tpu.vector_store %arg19[%c3_87, %c0_88, %c0_89], %152 {strides = array<i32>} : memref<4x8x8xbf16, #tpu.memory_space<vmem>>, vector<1x8x8xbf16>,
      %153 = vector.extract_strided_slice %108 {offsets = [0, 88], sizes = [8, 8], strides = [1, 1]} : vector<8x96xbf16> to vector<8x8xbf16>
      %c3_90 = arith.constant 3 : index
      %c0_91 = arith.constant 0 : index
      %c0_92 = arith.constant 0 : index
      %154 = vector.load %arg20[%c3_90, %c0_91, %c0_92] : memref<4x8x8xbf16, #tpu.memory_space<vmem>>, vector<1x8x8xbf16>
      %155 = vector.shape_cast %154 : vector<1x8x8xbf16> to vector<8x8xbf16>
      %156 = vector.shape_cast %153 : vector<8x8xbf16> to vector<1x8x8xbf16>
      tpu.vector_store %arg20[%c3_90, %c0_91, %c0_92], %156 {strides = array<i32>} : memref<4x8x8xbf16, #tpu.memory_space<vmem>>, vector<1x8x8xbf16>,
    } else {
    }
    %c8_i32 = arith.constant 8 : i32
    %3 = arith.muli %arg1, %c8_i32 : i32
    %4 = tpu.assume_multiple %3, 8 : i32
    %c0 = arith.constant 0 : index
    %5 = arith.index_cast %4 : i32 to index
    %c0_1 = arith.constant 0 : index
    %6 = vector.load %arg2[%c0, %5, %c0_1] : memref<1x8x32xf32, #tpu.memory_space<vmem>>, vector<1x8x32xf32>
    %7 = vector.shape_cast %6 : vector<1x8x32xf32> to vector<8x32xf32>
    %c0_2 = arith.constant 0 : index
    %8 = arith.index_cast %4 : i32 to index
    %c0_3 = arith.constant 0 : index
    %9 = vector.load %arg18[%c0_2, %8, %c0_3] : memref<4x8x8xbf16, #tpu.memory_space<vmem>>, vector<4x8x8xbf16>
    %c0_4 = arith.constant 0 : index
    %c0_5 = arith.constant 0 : index
    %c0_6 = arith.constant 0 : index
    %10 = vector.load %arg19[%c0_4, %c0_5, %c0_6] : memref<4x8x8xbf16, #tpu.memory_space<vmem>>, vector<4x8x8xbf16>
    "tpu.trace_start"() <{level = 10 : i32, message = "hqd,hkd->hqk"}> : () -> ()
    %cst = arith.constant dense<0.000000e+00> : vector<4x8x8xf32>
    %11 = tpu.matmul %9, %10, %cst {dimension_numbers = #tpu.dot_dimension_numbers<[2], [2], [1], [1], [0, 0, 0, 1, 1, 1], [0], [0]>} : vector<4x8x8xbf16>, vector<4x8x8xbf16>, vector<4x8x8xf32> -> vector<4x8x8xf32>
    "tpu.trace_stop"() : () -> ()
    %cst_7 = arith.constant dense<0xFF800000> : vector<4x8xf32>
    %12 = vector.multi_reduction <maximumf>, %11, %cst_7 [2] : vector<4x8x8xf32> to vector<4x8xf32>
    %13 = vector.shape_cast %12 : vector<4x8xf32> to vector<4x8x1xf32>
    %14 = vector.broadcast %13 : vector<4x8x1xf32> to vector<4x8x8xf32>
    %15 = arith.subf %11, %14 : vector<4x8x8xf32>
    %16 = math.exp %15 : vector<4x8x8xf32>
    %cst_8 = arith.constant dense<0.000000e+00> : vector<4x8xf32>
    %17 = vector.multi_reduction <add>, %16, %cst_8 [2] : vector<4x8x8xf32> to vector<4x8xf32>
    %18 = vector.shape_cast %17 : vector<4x8xf32> to vector<4x8x1xf32>
    %19 = arith.truncf %16 : vector<4x8x8xf32> to vector<4x8x8xbf16>
    %c0_9 = arith.constant 0 : index
    %c0_10 = arith.constant 0 : index
    %c0_11 = arith.constant 0 : index
    %20 = vector.load %arg20[%c0_9, %c0_10, %c0_11] : memref<4x8x8xbf16, #tpu.memory_space<vmem>>, vector<4x8x8xbf16>
    "tpu.trace_start"() <{level = 10 : i32, message = "hqk,hkd->hqd"}> : () -> ()
    %cst_12 = arith.constant dense<0.000000e+00> : vector<4x8x8xf32>
    %21 = tpu.matmul %19, %20, %cst_12 {dimension_numbers = #tpu.dot_dimension_numbers<[2], [1], [1], [2], [0, 0, 0, 1, 1, 2], [0], [0]>} : vector<4x8x8xbf16>, vector<4x8x8xbf16>, vector<4x8x8xf32> -> vector<4x8x8xf32>
    "tpu.trace_stop"() : () -> ()
    %22 = tpu.reciprocal %18 {approx = true} : vector<4x8x1xf32> -> vector<4x8x1xf32>
    %23 = vector.broadcast %22 : vector<4x8x1xf32> to vector<4x8x8xf32>
    %24 = arith.mulf %21, %23 : vector<4x8x8xf32>
    %25 = arith.truncf %24 : vector<4x8x8xf32> to vector<4x8x8xbf16>
    %c0_13 = arith.constant 0 : index
    %c0_14 = arith.constant 0 : index
    %c0_15 = arith.constant 0 : index
    %26 = vector.load %arg5[%c0_13, %c0_14, %c0_15] : memref<4x8x32xbf16, #tpu.memory_space<vmem>>, vector<4x8x32xbf16>
    "tpu.trace_start"() <{level = 10 : i32, message = "hqd,hde->hqe"}> : () -> ()
    %cst_16 = arith.constant dense<0.000000e+00> : vector<4x8x32xf32>
    %27 = tpu.matmul %25, %26, %cst_16 {dimension_numbers = #tpu.dot_dimension_numbers<[2], [1], [1], [2], [0, 0, 0, 1, 1, 2], [0], [0]>} : vector<4x8x8xbf16>, vector<4x8x32xbf16>, vector<4x8x32xf32> -> vector<4x8x32xf32>
    "tpu.trace_stop"() : () -> ()
    %cst_17 = arith.constant dense<0.000000e+00> : vector<8x32xf32>
    %28 = vector.multi_reduction <add>, %27, %cst_17 [0] : vector<4x8x32xf32> to vector<8x32xf32>
    %c0_18 = arith.constant 0 : index
    %c0_19 = arith.constant 0 : index
    %29 = vector.load %arg6[%c0_18, %c0_19] : memref<1x32xf32, #tpu.memory_space<vmem>>, vector<1x32xf32>
    %30 = vector.broadcast %29 : vector<1x32xf32> to vector<8x32xf32>
    %31 = arith.addf %28, %30 : vector<8x32xf32>
    %32 = arith.addf %7, %31 : vector<8x32xf32>
    %c0_20 = arith.constant 0 : index
    %c0_21 = arith.constant 0 : index
    %33 = vector.load %arg9[%c0_20, %c0_21] : memref<1x32xf32, #tpu.memory_space<vmem>>, vector<1x32xf32>
    %c0_22 = arith.constant 0 : index
    %c0_23 = arith.constant 0 : index
    %34 = vector.load %arg10[%c0_22, %c0_23] : memref<1x32xf32, #tpu.memory_space<vmem>>, vector<1x32xf32>
    %cst_24 = arith.constant dense<0.000000e+00> : vector<8xf32>
    %35 = vector.multi_reduction <add>, %32, %cst_24 [1] : vector<8x32xf32> to vector<8xf32>
    %36 = vector.shape_cast %35 : vector<8xf32> to vector<8x1xf32>
    %cst_25 = arith.constant 3.200000e+01 : f32
    %37 = vector.broadcast %cst_25 : f32 to vector<8x1xf32>
    %38 = arith.divf %36, %37 : vector<8x1xf32>
    %39 = vector.broadcast %38 : vector<8x1xf32> to vector<8x32xf32>
    %40 = arith.subf %32, %39 : vector<8x32xf32>
    %41 = arith.mulf %40, %40 : vector<8x32xf32>
    %cst_26 = arith.constant dense<0.000000e+00> : vector<8xf32>
    %42 = vector.multi_reduction <add>, %41, %cst_26 [1] : vector<8x32xf32> to vector<8xf32>
    %43 = vector.shape_cast %42 : vector<8xf32> to vector<8x1xf32>
    %cst_27 = arith.constant 3.200000e+01 : f32
    %44 = vector.broadcast %cst_27 : f32 to vector<8x1xf32>
    %45 = arith.divf %43, %44 : vector<8x1xf32>
    %46 = vector.broadcast %38 : vector<8x1xf32> to vector<8x32xf32>
    %47 = arith.subf %32, %46 : vector<8x32xf32>
    %cst_28 = arith.constant 9.99999974E-6 : f32
    %48 = vector.broadcast %cst_28 : f32 to vector<8x1xf32>
    %49 = arith.addf %45, %48 : vector<8x1xf32>
    %50 = math.rsqrt %49 : vector<8x1xf32>
    %51 = vector.broadcast %50 : vector<8x1xf32> to vector<8x32xf32>
    %52 = arith.mulf %47, %51 : vector<8x32xf32>
    %53 = vector.broadcast %33 : vector<1x32xf32> to vector<8x32xf32>
    %54 = arith.mulf %52, %53 : vector<8x32xf32>
    %55 = vector.broadcast %34 : vector<1x32xf32> to vector<8x32xf32>
    %56 = arith.addf %54, %55 : vector<8x32xf32>
    %57 = arith.truncf %56 : vector<8x32xf32> to vector<8x32xbf16>
    %c0_29 = arith.constant 0 : index
    %c0_30 = arith.constant 0 : index
    %58 = vector.load %arg11[%c0_29, %c0_30] : memref<32x64xbf16, #tpu.memory_space<vmem>>, vector<32x64xbf16>
    %cst_31 = arith.constant dense<0.000000e+00> : vector<8x64xf32>
    %59 = tpu.matmul %57, %58, %cst_31 {dimension_numbers = #tpu.dot_dimension_numbers<[1], [0], [0], [1], [0, 0, 1, 1], [], []>} : vector<8x32xbf16>, vector<32x64xbf16>, vector<8x64xf32> -> vector<8x64xf32>
    %c0_32 = arith.constant 0 : index
    %c0_33 = arith.constant 0 : index
    %60 = vector.load %arg12[%c0_32, %c0_33] : memref<1x64xf32, #tpu.memory_space<vmem>>, vector<1x64xf32>
    %61 = vector.broadcast %60 : vector<1x64xf32> to vector<8x64xf32>
    %62 = arith.addf %59, %61 : vector<8x64xf32>
    %cst_34 = arith.constant 0.000000e+00 : f32
    %63 = vector.broadcast %cst_34 : f32 to vector<8x64xf32>
    %64 = arith.maximumf %62, %63 : vector<8x64xf32>
    %65 = arith.truncf %64 : vector<8x64xf32> to vector<8x64xbf16>
    %c0_35 = arith.constant 0 : index
    %c0_36 = arith.constant 0 : index
    %66 = vector.load %arg13[%c0_35, %c0_36] : memref<64x32xbf16, #tpu.memory_space<vmem>>, vector<64x32xbf16>
    %cst_37 = arith.constant dense<0.000000e+00> : vector<8x32xf32>
    %67 = tpu.matmul %65, %66, %cst_37 {dimension_numbers = #tpu.dot_dimension_numbers<[1], [0], [0], [1], [0, 0, 1, 1], [], []>} : vector<8x64xbf16>, vector<64x32xbf16>, vector<8x32xf32> -> vector<8x32xf32>
    %c0_38 = arith.constant 0 : index
    %c0_39 = arith.constant 0 : index
    %68 = vector.load %arg14[%c0_38, %c0_39] : memref<1x32xf32, #tpu.memory_space<vmem>>, vector<1x32xf32>
    %69 = vector.broadcast %68 : vector<1x32xf32> to vector<8x32xf32>
    %70 = arith.addf %67, %69 : vector<8x32xf32>
    %71 = arith.addf %32, %70 : vector<8x32xf32>
    %72 = arith.truncf %71 : vector<8x32xf32> to vector<8x32xbf16>
    %c0_40 = arith.constant 0 : index
    %c0_41 = arith.constant 0 : index
    %c0_42 = arith.constant 0 : index
    %73 = vector.load %arg17[%c0_40, %c0_41, %c0_42] : memref<1x8x32xbf16, #tpu.memory_space<vmem>>, vector<1x8x32xbf16>
    %74 = vector.shape_cast %73 : vector<1x8x32xbf16> to vector<8x32xbf16>
    %75 = vector.shape_cast %72 : vector<8x32xbf16> to vector<1x8x32xbf16>
    tpu.vector_store %arg17[%c0_40, %c0_41, %c0_42], %75 {strides = array<i32>} : memref<1x8x32xbf16, #tpu.memory_space<vmem>>, vector<1x8x32xbf16>,
    return
  }
  func.func @transform_0(%arg0: i32, %arg1: i32) -> (i32, i32, i32) {
    %c0_i32 = arith.constant 0 : i32
    %c0_i32_0 = arith.constant 0 : i32
    %c0_i32_1 = arith.constant 0 : i32
    return %arg0, %c0_i32, %c0_i32_0 : i32, i32, i32
  }
  func.func @transform_1(%arg0: i32, %arg1: i32) -> (i32, i32) {
    %c0_i32 = arith.constant 0 : i32
    %c0_i32_0 = arith.constant 0 : i32
    %c0_i32_1 = arith.constant 0 : i32
    return %c0_i32, %c0_i32_0 : i32, i32
  }
  func.func @transform_2(%arg0: i32, %arg1: i32) -> (i32, i32) {
    %c0_i32 = arith.constant 0 : i32
    %c0_i32_0 = arith.constant 0 : i32
    %c0_i32_1 = arith.constant 0 : i32
    return %c0_i32, %c0_i32_0 : i32, i32
  }
  func.func @transform_3(%arg0: i32, %arg1: i32) -> (i32, i32, i32) {
    %c0_i32 = arith.constant 0 : i32
    %c0_i32_0 = arith.constant 0 : i32
    %c0_i32_1 = arith.constant 0 : i32
    %c0_i32_2 = arith.constant 0 : i32
    return %c0_i32, %c0_i32_0, %c0_i32_1 : i32, i32, i32
  }
  func.func @transform_4(%arg0: i32, %arg1: i32) -> (i32, i32) {
    %c0_i32 = arith.constant 0 : i32
    %c0_i32_0 = arith.constant 0 : i32
    %c0_i32_1 = arith.constant 0 : i32
    return %c0_i32, %c0_i32_0 : i32, i32
  }
  func.func @transform_5(%arg0: i32, %arg1: i32) -> (i32, i32) {
    %c0_i32 = arith.constant 0 : i32
    %c0_i32_0 = arith.constant 0 : i32
    %c0_i32_1 = arith.constant 0 : i32
    return %c0_i32, %c0_i32_0 : i32, i32
  }
  func.func @transform_6(%arg0: i32, %arg1: i32) -> (i32, i32) {
    %c0_i32 = arith.constant 0 : i32
    %c0_i32_0 = arith.constant 0 : i32
    %c0_i32_1 = arith.constant 0 : i32
    return %c0_i32, %c0_i32_0 : i32, i32
  }
  func.func @transform_7(%arg0: i32, %arg1: i32) -> (i32, i32) {
    %c0_i32 = arith.constant 0 : i32
    %c0_i32_0 = arith.constant 0 : i32
    %c0_i32_1 = arith.constant 0 : i32
    return %c0_i32, %c0_i32_0 : i32, i32
  }
  func.func @transform_8(%arg0: i32, %arg1: i32) -> (i32, i32) {
    %c0_i32 = arith.constant 0 : i32
    %c0_i32_0 = arith.constant 0 : i32
    %c0_i32_1 = arith.constant 0 : i32
    return %c0_i32, %c0_i32_0 : i32, i32
  }
  func.func @transform_9(%arg0: i32, %arg1: i32) -> (i32, i32) {
    %c0_i32 = arith.constant 0 : i32
    %c0_i32_0 = arith.constant 0 : i32
    %c0_i32_1 = arith.constant 0 : i32
    return %c0_i32, %c0_i32_0 : i32, i32
  }
  func.func @transform_10(%arg0: i32, %arg1: i32) -> (i32, i32) {
    %c0_i32 = arith.constant 0 : i32
    %c0_i32_0 = arith.constant 0 : i32
    %c0_i32_1 = arith.constant 0 : i32
    return %c0_i32, %c0_i32_0 : i32, i32
  }
  func.func @transform_11(%arg0: i32, %arg1: i32) -> (i32, i32) {
    %c0_i32 = arith.constant 0 : i32
    %c0_i32_0 = arith.constant 0 : i32
    %c0_i32_1 = arith.constant 0 : i32
    return %c0_i32, %c0_i32_0 : i32, i32
  }
  func.func @transform_12(%arg0: i32, %arg1: i32) -> (i32, i32) {
    %c0_i32 = arith.constant 0 : i32
    %c0_i32_0 = arith.constant 0 : i32
    %c0_i32_1 = arith.constant 0 : i32
    return %c0_i32, %c0_i32_0 : i32, i32
  }
  func.func @transform_13(%arg0: i32, %arg1: i32) -> (i32, i32) {
    %c0_i32 = arith.constant 0 : i32
    %c0_i32_0 = arith.constant 0 : i32
    %c0_i32_1 = arith.constant 0 : i32
    return %c0_i32, %c0_i32_0 : i32, i32
  }
  func.func @transform_14(%arg0: i32, %arg1: i32) -> (i32, i32) {
    %c0_i32 = arith.constant 0 : i32
    %c0_i32_0 = arith.constant 0 : i32
    %c0_i32_1 = arith.constant 0 : i32
    return %c0_i32, %c0_i32_0 : i32, i32
  }
  func.func @transform_15(%arg0: i32, %arg1: i32) -> (i32, i32, i32) {
    %c0_i32 = arith.constant 0 : i32
    %c0_i32_0 = arith.constant 0 : i32
    return %arg0, %arg1, %c0_i32 : i32, i32, i32
  }
}

module attributes {stable_mosaic.version = 11 : i64} {
  func.func @encoder_layer_kernel(%arg0: i32, %arg1: i32, %arg2: memref<1x8x32xf32, #tpu.memory_space<vmem>>, %arg3: memref<32x96xbf16, #tpu.memory_space<vmem>>, %arg4: memref<1x96xf32, #tpu.memory_space<vmem>>, %arg5: memref<4x8x32xbf16, #tpu.memory_space<vmem>>, %arg6: memref<1x32xf32, #tpu.memory_space<vmem>>, %arg7: memref<1x32xf32, #tpu.memory_space<vmem>>, %arg8: memref<1x32xf32, #tpu.memory_space<vmem>>, %arg9: memref<1x32xf32, #tpu.memory_space<vmem>>, %arg10: memref<1x32xf32, #tpu.memory_space<vmem>>, %arg11: memref<32x64xbf16, #tpu.memory_space<vmem>>, %arg12: memref<1x64xf32, #tpu.memory_space<vmem>>, %arg13: memref<64x32xbf16, #tpu.memory_space<vmem>>, %arg14: memref<1x32xf32, #tpu.memory_space<vmem>>, %arg15: memref<1x32xf32, #tpu.memory_space<vmem>>, %arg16: memref<1x32xf32, #tpu.memory_space<vmem>>, %arg17: memref<1x8x32xbf16, #tpu.memory_space<vmem>>, %arg18: memref<4x8x8xbf16, #tpu.memory_space<vmem>>, %arg19: memref<4x8x8xbf16, #tpu.memory_space<vmem>>, %arg20: memref<4x8x8xbf16, #tpu.memory_space<vmem>>) attributes {dimension_semantics = [#tpu.dimension_semantics<parallel>, #tpu.dimension_semantics<arbitrary>], iteration_bounds = array<i64: 2, 1>, scalar_prefetch = 0 : i64, scratch_operands = 3 : i64, tpu.core_type = #tpu.core_type<tc>, window_params = [{transform_indices = @transform_0, window_bounds = array<i64: 1, 8, 32>}, {pipeline_mode = #tpu.pipeline_mode<synchronous>, transform_indices = @transform_1, window_bounds = array<i64: 32, 96>}, {pipeline_mode = #tpu.pipeline_mode<synchronous>, transform_indices = @transform_2, window_bounds = array<i64: 1, 96>}, {pipeline_mode = #tpu.pipeline_mode<synchronous>, transform_indices = @transform_3, window_bounds = array<i64: 4, 8, 32>}, {pipeline_mode = #tpu.pipeline_mode<synchronous>, transform_indices = @transform_4, window_bounds = array<i64: 1, 32>}, {pipeline_mode = #tpu.pipeline_mode<synchronous>, transform_indices = @transform_5, window_bounds = array<i64: 1, 32>}, {pipeline_mode = #tpu.pipeline_mode<synchronous>, transform_indices = @transform_6, window_bounds = array<i64: 1, 32>}, {pipeline_mode = #tpu.pipeline_mode<synchronous>, transform_indices = @transform_7, window_bounds = array<i64: 1, 32>}, {pipeline_mode = #tpu.pipeline_mode<synchronous>, transform_indices = @transform_8, window_bounds = array<i64: 1, 32>}, {pipeline_mode = #tpu.pipeline_mode<synchronous>, transform_indices = @transform_9, window_bounds = array<i64: 32, 64>}, {pipeline_mode = #tpu.pipeline_mode<synchronous>, transform_indices = @transform_10, window_bounds = array<i64: 1, 64>}, {pipeline_mode = #tpu.pipeline_mode<synchronous>, transform_indices = @transform_11, window_bounds = array<i64: 64, 32>}, {pipeline_mode = #tpu.pipeline_mode<synchronous>, transform_indices = @transform_12, window_bounds = array<i64: 1, 32>}, {pipeline_mode = #tpu.pipeline_mode<synchronous>, transform_indices = @transform_13, window_bounds = array<i64: 1, 32>}, {pipeline_mode = #tpu.pipeline_mode<synchronous>, transform_indices = @transform_14, window_bounds = array<i64: 1, 32>}, {transform_indices = @transform_15, window_bounds = array<i64: 1, 8, 32>}]} {
    %c0_i32 = arith.constant 0 : i32
    %0 = arith.cmpi eq, %arg1, %c0_i32 : i32
    %1 = arith.extui %0 : i1 to i32
    %c0_i32_0 = arith.constant 0 : i32
    %2 = arith.cmpi ne, %1, %c0_i32_0 : i32
    scf.if %2 {
      %c0_43 = arith.constant 0 : index
      %c0_44 = arith.constant 0 : index
      %c0_45 = arith.constant 0 : index
      %76 = vector.load %arg2[%c0_43, %c0_44, %c0_45] : memref<1x8x32xf32, #tpu.memory_space<vmem>>, vector<1x8x32xf32>
      %77 = vector.shape_cast %76 : vector<1x8x32xf32> to vector<8x32xf32>
      %c0_46 = arith.constant 0 : index
      %c0_47 = arith.constant 0 : index
      %78 = vector.load %arg7[%c0_46, %c0_47] : memref<1x32xf32, #tpu.memory_space<vmem>>, vector<1x32xf32>
      %c0_48 = arith.constant 0 : index
      %c0_49 = arith.constant 0 : index
      %79 = vector.load %arg8[%c0_48, %c0_49] : memref<1x32xf32, #tpu.memory_space<vmem>>, vector<1x32xf32>
      %cst_50 = arith.constant dense<0.000000e+00> : vector<8xf32>
      %80 = vector.multi_reduction <add>, %77, %cst_50 [1] : vector<8x32xf32> to vector<8xf32>
      %81 = vector.shape_cast %80 : vector<8xf32> to vector<8x1xf32>
      %cst_51 = arith.constant 3.200000e+01 : f32
      %82 = vector.broadcast %cst_51 : f32 to vector<8x1xf32>
      %83 = arith.divf %81, %82 : vector<8x1xf32>
      %84 = vector.broadcast %83 : vector<8x1xf32> to vector<8x32xf32>
      %85 = arith.subf %77, %84 : vector<8x32xf32>
      %86 = arith.mulf %85, %85 : vector<8x32xf32>
      %cst_52 = arith.constant dense<0.000000e+00> : vector<8xf32>
      %87 = vector.multi_reduction <add>, %86, %cst_52 [1] : vector<8x32xf32> to vector<8xf32>
      %88 = vector.shape_cast %87 : vector<8xf32> to vector<8x1xf32>
      %cst_53 = arith.constant 3.200000e+01 : f32
      %89 = vector.broadcast %cst_53 : f32 to vector<8x1xf32>
      %90 = arith.divf %88, %89 : vector<8x1xf32>
      %91 = vector.broadcast %83 : vector<8x1xf32> to vector<8x32xf32>
      %92 = arith.subf %77, %91 : vector<8x32xf32>
      %cst_54 = arith.constant 9.99999974E-6 : f32
      %93 = vector.broadcast %cst_54 : f32 to vector<8x1xf32>
      %94 = arith.addf %90, %93 : vector<8x1xf32>
      %95 = math.rsqrt %94 : vector<8x1xf32>
      %96 = vector.broadcast %95 : vector<8x1xf32> to vector<8x32xf32>
      %97 = arith.mulf %92, %96 : vector<8x32xf32>
      %98 = vector.broadcast %78 : vector<1x32xf32> to vector<8x32xf32>
      %99 = arith.mulf %97, %98 : vector<8x32xf32>
      %100 = vector.broadcast %79 : vector<1x32xf32> to vector<8x32xf32>
      %101 = arith.addf %99, %100 : vector<8x32xf32>
      %102 = arith.truncf %101 : vector<8x32xf32> to vector<8x32xbf16>
      %c0_55 = arith.constant 0 : index
      %c0_56 = arith.constant 0 : index
      %103 = vector.load %arg3[%c0_55, %c0_56] : memref<32x96xbf16, #tpu.memory_space<vmem>>, vector<32x96xbf16>
      %cst_57 = arith.constant dense<0.000000e+00> : vector<8x96xf32>
      %104 = tpu.matmul %102, %103, %cst_57 {dimension_numbers = #tpu.dot_dimension_numbers<[1], [0], [0], [1], [0, 0, 1, 1], [], []>} : vector<8x32xbf16>, vector<32x96xbf16>, vector<8x96xf32> -> vector<8x96xf32>
      %c0_58 = arith.constant 0 : index
      %c0_59 = arith.constant 0 : index
      %105 = vector.load %arg4[%c0_58, %c0_59] : memref<1x96xf32, #tpu.memory_space<vmem>>, vector<1x96xf32>
      %106 = vector.broadcast %105 : vector<1x96xf32> to vector<8x96xf32>
      %107 = arith.addf %104, %106 : vector<8x96xf32>
      %108 = arith.truncf %107 : vector<8x96xf32> to vector<8x96xbf16>
      %109 = vector.extract_strided_slice %108 {offsets = [0, 0], sizes = [8, 8], strides = [1, 1]} : vector<8x96xbf16> to vector<8x8xbf16>
      %c0_60 = arith.constant 0 : index
      %c0_61 = arith.constant 0 : index
      %c0_62 = arith.constant 0 : index
      %110 = vector.load %arg18[%c0_60, %c0_61, %c0_62] : memref<4x8x8xbf16, #tpu.memory_space<vmem>>, vector<1x8x8xbf16>
      %111 = vector.shape_cast %110 : vector<1x8x8xbf16> to vector<8x8xbf16>
      %112 = vector.shape_cast %109 : vector<8x8xbf16> to vector<1x8x8xbf16>
      tpu.vector_store %arg18[%c0_60, %c0_61, %c0_62], %112 {strides = array<i32>} : memref<4x8x8xbf16, #tpu.memory_space<vmem>>, vector<1x8x8xbf16>,
      %113 = vector.extract_strided_slice %108 {offsets = [0, 32], sizes = [8, 8], strides = [1, 1]} : vector<8x96xbf16> to vector<8x8xbf16>
      %c0_63 = arith.constant 0 : index
      %c0_64 = arith.constant 0 : index
      %c0_65 = arith.constant 0 : index
      %114 = vector.load %arg19[%c0_63, %c0_64, %c0_65] : memref<4x8x8xbf16, #tpu.memory_space<vmem>>, vector<1x8x8xbf16>
      %115 = vector.shape_cast %114 : vector<1x8x8xbf16> to vector<8x8xbf16>
      %116 = vector.shape_cast %113 : vector<8x8xbf16> to vector<1x8x8xbf16>
      tpu.vector_store %arg19[%c0_63, %c0_64, %c0_65], %116 {strides = array<i32>} : memref<4x8x8xbf16, #tpu.memory_space<vmem>>, vector<1x8x8xbf16>,
      %117 = vector.extract_strided_slice %108 {offsets = [0, 64], sizes = [8, 8], strides = [1, 1]} : vector<8x96xbf16> to vector<8x8xbf16>
      %c0_66 = arith.constant 0 : index
      %c0_67 = arith.constant 0 : index
      %c0_68 = arith.constant 0 : index
      %118 = vector.load %arg20[%c0_66, %c0_67, %c0_68] : memref<4x8x8xbf16, #tpu.memory_space<vmem>>, vector<1x8x8xbf16>
      %119 = vector.shape_cast %118 : vector<1x8x8xbf16> to vector<8x8xbf16>
      %120 = vector.shape_cast %117 : vector<8x8xbf16> to vector<1x8x8xbf16>
      tpu.vector_store %arg20[%c0_66, %c0_67, %c0_68], %120 {strides = array<i32>} : memref<4x8x8xbf16, #tpu.memory_space<vmem>>, vector<1x8x8xbf16>,
      %121 = vector.extract_strided_slice %108 {offsets = [0, 8], sizes = [8, 8], strides = [1, 1]} : vector<8x96xbf16> to vector<8x8xbf16>
      %c1 = arith.constant 1 : index
      %c0_69 = arith.constant 0 : index
      %c0_70 = arith.constant 0 : index
      %122 = vector.load %arg18[%c1, %c0_69, %c0_70] : memref<4x8x8xbf16, #tpu.memory_space<vmem>>, vector<1x8x8xbf16>
      %123 = vector.shape_cast %122 : vector<1x8x8xbf16> to vector<8x8xbf16>
      %124 = vector.shape_cast %121 : vector<8x8xbf16> to vector<1x8x8xbf16>
      tpu.vector_store %arg18[%c1, %c0_69, %c0_70], %124 {strides = array<i32>} : memref<4x8x8xbf16, #tpu.memory_space<vmem>>, vector<1x8x8xbf16>,
      %125 = vector.extract_strided_slice %108 {offsets = [0, 40], sizes = [8, 8], strides = [1, 1]} : vector<8x96xbf16> to vector<8x8xbf16>
      %c1_71 = arith.constant 1 : index
      %c0_72 = arith.constant 0 : index
      %c0_73 = arith.constant 0 : index
      %126 = vector.load %arg19[%c1_71, %c0_72, %c0_73] : memref<4x8x8xbf16, #tpu.memory_space<vmem>>, vector<1x8x8xbf16>
      %127 = vector.shape_cast %126 : vector<1x8x8xbf16> to vector<8x8xbf16>
      %128 = vector.shape_cast %125 : vector<8x8xbf16> to vector<1x8x8xbf16>
      tpu.vector_store %arg19[%c1_71, %c0_72, %c0_73], %128 {strides = array<i32>} : memref<4x8x8xbf16, #tpu.memory_space<vmem>>, vector<1x8x8xbf16>,
      %129 = vector.extract_strided_slice %108 {offsets = [0, 72], sizes = [8, 8], strides = [1, 1]} : vector<8x96xbf16> to vector<8x8xbf16>
      %c1_74 = arith.constant 1 : index
      %c0_75 = arith.constant 0 : index
      %c0_76 = arith.constant 0 : index
      %130 = vector.load %arg20[%c1_74, %c0_75, %c0_76] : memref<4x8x8xbf16, #tpu.memory_space<vmem>>, vector<1x8x8xbf16>
      %131 = vector.shape_cast %130 : vector<1x8x8xbf16> to vector<8x8xbf16>
      %132 = vector.shape_cast %129 : vector<8x8xbf16> to vector<1x8x8xbf16>
      tpu.vector_store %arg20[%c1_74, %c0_75, %c0_76], %132 {strides = array<i32>} : memref<4x8x8xbf16, #tpu.memory_space<vmem>>, vector<1x8x8xbf16>,
      %133 = vector.extract_strided_slice %108 {offsets = [0, 16], sizes = [8, 8], strides = [1, 1]} : vector<8x96xbf16> to vector<8x8xbf16>
      %c2 = arith.constant 2 : index
      %c0_77 = arith.constant 0 : index
      %c0_78 = arith.constant 0 : index
      %134 = vector.load %arg18[%c2, %c0_77, %c0_78] : memref<4x8x8xbf16, #tpu.memory_space<vmem>>, vector<1x8x8xbf16>
      %135 = vector.shape_cast %134 : vector<1x8x8xbf16> to vector<8x8xbf16>
      %136 = vector.shape_cast %133 : vector<8x8xbf16> to vector<1x8x8xbf16>
      tpu.vector_store %arg18[%c2, %c0_77, %c0_78], %136 {strides = array<i32>} : memref<4x8x8xbf16, #tpu.memory_space<vmem>>, vector<1x8x8xbf16>,
      %137 = vector.extract_strided_slice %108 {offsets = [0, 48], sizes = [8, 8], strides = [1, 1]} : vector<8x96xbf16> to vector<8x8xbf16>
      %c2_79 = arith.constant 2 : index
      %c0_80 = arith.constant 0 : index
      %c0_81 = arith.constant 0 : index
      %138 = vector.load %arg19[%c2_79, %c0_80, %c0_81] : memref<4x8x8xbf16, #tpu.memory_space<vmem>>, vector<1x8x8xbf16>
      %139 = vector.shape_cast %138 : vector<1x8x8xbf16> to vector<8x8xbf16>
      %140 = vector.shape_cast %137 : vector<8x8xbf16> to vector<1x8x8xbf16>
      tpu.vector_store %arg19[%c2_79, %c0_80, %c0_81], %140 {strides = array<i32>} : memref<4x8x8xbf16, #tpu.memory_space<vmem>>, vector<1x8x8xbf16>,
      %141 = vector.extract_strided_slice %108 {offsets = [0, 80], sizes = [8, 8], strides = [1, 1]} : vector<8x96xbf16> to vector<8x8xbf16>
      %c2_82 = arith.constant 2 : index
      %c0_83 = arith.constant 0 : index
      %c0_84 = arith.constant 0 : index
      %142 = vector.load %arg20[%c2_82, %c0_83, %c0_84] : memref<4x8x8xbf16, #tpu.memory_space<vmem>>, vector<1x8x8xbf16>
      %143 = vector.shape_cast %142 : vector<1x8x8xbf16> to vector<8x8xbf16>
      %144 = vector.shape_cast %141 : vector<8x8xbf16> to vector<1x8x8xbf16>
      tpu.vector_store %arg20[%c2_82, %c0_83, %c0_84], %144 {strides = array<i32>} : memref<4x8x8xbf16, #tpu.memory_space<vmem>>, vector<1x8x8xbf16>,
      %145 = vector.extract_strided_slice %108 {offsets = [0, 24], sizes = [8, 8], strides = [1, 1]} : vector<8x96xbf16> to vector<8x8xbf16>
      %c3 = arith.constant 3 : index
      %c0_85 = arith.constant 0 : index
      %c0_86 = arith.constant 0 : index
      %146 = vector.load %arg18[%c3, %c0_85, %c0_86] : memref<4x8x8xbf16, #tpu.memory_space<vmem>>, vector<1x8x8xbf16>
      %147 = vector.shape_cast %146 : vector<1x8x8xbf16> to vector<8x8xbf16>
      %148 = vector.shape_cast %145 : vector<8x8xbf16> to vector<1x8x8xbf16>
      tpu.vector_store %arg18[%c3, %c0_85, %c0_86], %148 {strides = array<i32>} : memref<4x8x8xbf16, #tpu.memory_space<vmem>>, vector<1x8x8xbf16>,
      %149 = vector.extract_strided_slice %108 {offsets = [0, 56], sizes = [8, 8], strides = [1, 1]} : vector<8x96xbf16> to vector<8x8xbf16>
      %c3_87 = arith.constant 3 : index
      %c0_88 = arith.constant 0 : index
      %c0_89 = arith.constant 0 : index
      %150 = vector.load %arg19[%c3_87, %c0_88, %c0_89] : memref<4x8x8xbf16, #tpu.memory_space<vmem>>, vector<1x8x8xbf16>
      %151 = vector.shape_cast %150 : vector<1x8x8xbf16> to vector<8x8xbf16>
      %152 = vector.shape_cast %149 : vector<8x8xbf16> to vector<1x8x8xbf16>
      tpu.vector_store %arg19[%c3_87, %c0_88, %c0_89], %152 {strides = array<i32>} : memref<4x8x8xbf16, #tpu.memory_space<vmem>>, vector<1x8x8xbf16>,
      %153 = vector.extract_strided_slice %108 {offsets = [0, 88], sizes = [8, 8], strides = [1, 1]} : vector<8x96xbf16> to vector<8x8xbf16>
      %c3_90 = arith.constant 3 : index
      %c0_91 = arith.constant 0 : index
      %c0_92 = arith.constant 0 : index
      %154 = vector.load %arg20[%c3_90, %c0_91, %c0_92] : memref<4x8x8xbf16, #tpu.memory_space<vmem>>, vector<1x8x8xbf16>
      %155 = vector.shape_cast %154 : vector<1x8x8xbf16> to vector<8x8xbf16>
      %156 = vector.shape_cast %153 : vector<8x8xbf16> to vector<1x8x8xbf16>
      tpu.vector_store %arg20[%c3_90, %c0_91, %c0_92], %156 {strides = array<i32>} : memref<4x8x8xbf16, #tpu.memory_space<vmem>>, vector<1x8x8xbf16>,
    } else {
    }
    %c8_i32 = arith.constant 8 : i32
    %3 = arith.muli %arg1, %c8_i32 : i32
    %4 = tpu.assume_multiple %3, 8 : i32
    %c0 = arith.constant 0 : index
    %5 = arith.index_cast %4 : i32 to index
    %c0_1 = arith.constant 0 : index
    %6 = vector.load %arg2[%c0, %5, %c0_1] : memref<1x8x32xf32, #tpu.memory_space<vmem>>, vector<1x8x32xf32>
    %7 = vector.shape_cast %6 : vector<1x8x32xf32> to vector<8x32xf32>
    %c0_2 = arith.constant 0 : index
    %8 = arith.index_cast %4 : i32 to index
    %c0_3 = arith.constant 0 : index
    %9 = vector.load %arg18[%c0_2, %8, %c0_3] : memref<4x8x8xbf16, #tpu.memory_space<vmem>>, vector<4x8x8xbf16>
    %c0_4 = arith.constant 0 : index
    %c0_5 = arith.constant 0 : index
    %c0_6 = arith.constant 0 : index
    %10 = vector.load %arg19[%c0_4, %c0_5, %c0_6] : memref<4x8x8xbf16, #tpu.memory_space<vmem>>, vector<4x8x8xbf16>
    "tpu.trace_start"() <{level = 10 : i32, message = "hqd,hkd->hqk"}> : () -> ()
    %cst = arith.constant dense<0.000000e+00> : vector<4x8x8xf32>
    %11 = tpu.matmul %9, %10, %cst {dimension_numbers = #tpu.dot_dimension_numbers<[2], [2], [1], [1], [0, 0, 0, 1, 1, 1], [0], [0]>} : vector<4x8x8xbf16>, vector<4x8x8xbf16>, vector<4x8x8xf32> -> vector<4x8x8xf32>
    "tpu.trace_stop"() : () -> ()
    %cst_7 = arith.constant dense<0xFF800000> : vector<4x8xf32>
    %12 = vector.multi_reduction <maximumf>, %11, %cst_7 [2] : vector<4x8x8xf32> to vector<4x8xf32>
    %13 = vector.shape_cast %12 : vector<4x8xf32> to vector<4x8x1xf32>
    %14 = vector.broadcast %13 : vector<4x8x1xf32> to vector<4x8x8xf32>
    %15 = arith.subf %11, %14 : vector<4x8x8xf32>
    %16 = math.exp %15 : vector<4x8x8xf32>
    %cst_8 = arith.constant dense<0.000000e+00> : vector<4x8xf32>
    %17 = vector.multi_reduction <add>, %16, %cst_8 [2] : vector<4x8x8xf32> to vector<4x8xf32>
    %18 = vector.shape_cast %17 : vector<4x8xf32> to vector<4x8x1xf32>
    %19 = arith.truncf %16 : vector<4x8x8xf32> to vector<4x8x8xbf16>
    %c0_9 = arith.constant 0 : index
    %c0_10 = arith.constant 0 : index
    %c0_11 = arith.constant 0 : index
    %20 = vector.load %arg20[%c0_9, %c0_10, %c0_11] : memref<4x8x8xbf16, #tpu.memory_space<vmem>>, vector<4x8x8xbf16>
    "tpu.trace_start"() <{level = 10 : i32, message = "hqk,hkd->hqd"}> : () -> ()
    %cst_12 = arith.constant dense<0.000000e+00> : vector<4x8x8xf32>
    %21 = tpu.matmul %19, %20, %cst_12 {dimension_numbers = #tpu.dot_dimension_numbers<[2], [1], [1], [2], [0, 0, 0, 1, 1, 2], [0], [0]>} : vector<4x8x8xbf16>, vector<4x8x8xbf16>, vector<4x8x8xf32> -> vector<4x8x8xf32>
    "tpu.trace_stop"() : () -> ()
    %22 = tpu.reciprocal %18 {approx = true} : vector<4x8x1xf32> -> vector<4x8x1xf32>
    %23 = vector.broadcast %22 : vector<4x8x1xf32> to vector<4x8x8xf32>
    %24 = arith.mulf %21, %23 : vector<4x8x8xf32>
    %25 = arith.truncf %24 : vector<4x8x8xf32> to vector<4x8x8xbf16>
    %c0_13 = arith.constant 0 : index
    %c0_14 = arith.constant 0 : index
    %c0_15 = arith.constant 0 : index
    %26 = vector.load %arg5[%c0_13, %c0_14, %c0_15] : memref<4x8x32xbf16, #tpu.memory_space<vmem>>, vector<4x8x32xbf16>
    "tpu.trace_start"() <{level = 10 : i32, message = "hqd,hde->hqe"}> : () -> ()
    %cst_16 = arith.constant dense<0.000000e+00> : vector<4x8x32xf32>
    %27 = tpu.matmul %25, %26, %cst_16 {dimension_numbers = #tpu.dot_dimension_numbers<[2], [1], [1], [2], [0, 0, 0, 1, 1, 2], [0], [0]>} : vector<4x8x8xbf16>, vector<4x8x32xbf16>, vector<4x8x32xf32> -> vector<4x8x32xf32>
    "tpu.trace_stop"() : () -> ()
    %cst_17 = arith.constant dense<0.000000e+00> : vector<8x32xf32>
    %28 = vector.multi_reduction <add>, %27, %cst_17 [0] : vector<4x8x32xf32> to vector<8x32xf32>
    %c0_18 = arith.constant 0 : index
    %c0_19 = arith.constant 0 : index
    %29 = vector.load %arg6[%c0_18, %c0_19] : memref<1x32xf32, #tpu.memory_space<vmem>>, vector<1x32xf32>
    %30 = vector.broadcast %29 : vector<1x32xf32> to vector<8x32xf32>
    %31 = arith.addf %28, %30 : vector<8x32xf32>
    %32 = arith.addf %7, %31 : vector<8x32xf32>
    %c0_20 = arith.constant 0 : index
    %c0_21 = arith.constant 0 : index
    %33 = vector.load %arg9[%c0_20, %c0_21] : memref<1x32xf32, #tpu.memory_space<vmem>>, vector<1x32xf32>
    %c0_22 = arith.constant 0 : index
    %c0_23 = arith.constant 0 : index
    %34 = vector.load %arg10[%c0_22, %c0_23] : memref<1x32xf32, #tpu.memory_space<vmem>>, vector<1x32xf32>
    %cst_24 = arith.constant dense<0.000000e+00> : vector<8xf32>
    %35 = vector.multi_reduction <add>, %32, %cst_24 [1] : vector<8x32xf32> to vector<8xf32>
    %36 = vector.shape_cast %35 : vector<8xf32> to vector<8x1xf32>
    %cst_25 = arith.constant 3.200000e+01 : f32
    %37 = vector.broadcast %cst_25 : f32 to vector<8x1xf32>
    %38 = arith.divf %36, %37 : vector<8x1xf32>
    %39 = vector.broadcast %38 : vector<8x1xf32> to vector<8x32xf32>
    %40 = arith.subf %32, %39 : vector<8x32xf32>
    %41 = arith.mulf %40, %40 : vector<8x32xf32>
    %cst_26 = arith.constant dense<0.000000e+00> : vector<8xf32>
    %42 = vector.multi_reduction <add>, %41, %cst_26 [1] : vector<8x32xf32> to vector<8xf32>
    %43 = vector.shape_cast %42 : vector<8xf32> to vector<8x1xf32>
    %cst_27 = arith.constant 3.200000e+01 : f32
    %44 = vector.broadcast %cst_27 : f32 to vector<8x1xf32>
    %45 = arith.divf %43, %44 : vector<8x1xf32>
    %46 = vector.broadcast %38 : vector<8x1xf32> to vector<8x32xf32>
    %47 = arith.subf %32, %46 : vector<8x32xf32>
    %cst_28 = arith.constant 9.99999974E-6 : f32
    %48 = vector.broadcast %cst_28 : f32 to vector<8x1xf32>
    %49 = arith.addf %45, %48 : vector<8x1xf32>
    %50 = math.rsqrt %49 : vector<8x1xf32>
    %51 = vector.broadcast %50 : vector<8x1xf32> to vector<8x32xf32>
    %52 = arith.mulf %47, %51 : vector<8x32xf32>
    %53 = vector.broadcast %33 : vector<1x32xf32> to vector<8x32xf32>
    %54 = arith.mulf %52, %53 : vector<8x32xf32>
    %55 = vector.broadcast %34 : vector<1x32xf32> to vector<8x32xf32>
    %56 = arith.addf %54, %55 : vector<8x32xf32>
    %57 = arith.truncf %56 : vector<8x32xf32> to vector<8x32xbf16>
    %c0_29 = arith.constant 0 : index
    %c0_30 = arith.constant 0 : index
    %58 = vector.load %arg11[%c0_29, %c0_30] : memref<32x64xbf16, #tpu.memory_space<vmem>>, vector<32x64xbf16>
    %cst_31 = arith.constant dense<0.000000e+00> : vector<8x64xf32>
    %59 = tpu.matmul %57, %58, %cst_31 {dimension_numbers = #tpu.dot_dimension_numbers<[1], [0], [0], [1], [0, 0, 1, 1], [], []>} : vector<8x32xbf16>, vector<32x64xbf16>, vector<8x64xf32> -> vector<8x64xf32>
    %c0_32 = arith.constant 0 : index
    %c0_33 = arith.constant 0 : index
    %60 = vector.load %arg12[%c0_32, %c0_33] : memref<1x64xf32, #tpu.memory_space<vmem>>, vector<1x64xf32>
    %61 = vector.broadcast %60 : vector<1x64xf32> to vector<8x64xf32>
    %62 = arith.addf %59, %61 : vector<8x64xf32>
    %cst_34 = arith.constant 0.000000e+00 : f32
    %63 = vector.broadcast %cst_34 : f32 to vector<8x64xf32>
    %64 = arith.maximumf %62, %63 : vector<8x64xf32>
    %65 = arith.truncf %64 : vector<8x64xf32> to vector<8x64xbf16>
    %c0_35 = arith.constant 0 : index
    %c0_36 = arith.constant 0 : index
    %66 = vector.load %arg13[%c0_35, %c0_36] : memref<64x32xbf16, #tpu.memory_space<vmem>>, vector<64x32xbf16>
    %cst_37 = arith.constant dense<0.000000e+00> : vector<8x32xf32>
    %67 = tpu.matmul %65, %66, %cst_37 {dimension_numbers = #tpu.dot_dimension_numbers<[1], [0], [0], [1], [0, 0, 1, 1], [], []>} : vector<8x64xbf16>, vector<64x32xbf16>, vector<8x32xf32> -> vector<8x32xf32>
    %c0_38 = arith.constant 0 : index
    %c0_39 = arith.constant 0 : index
    %68 = vector.load %arg14[%c0_38, %c0_39] : memref<1x32xf32, #tpu.memory_space<vmem>>, vector<1x32xf32>
    %69 = vector.broadcast %68 : vector<1x32xf32> to vector<8x32xf32>
    %70 = arith.addf %67, %69 : vector<8x32xf32>
    %71 = arith.addf %32, %70 : vector<8x32xf32>
    %72 = arith.truncf %71 : vector<8x32xf32> to vector<8x32xbf16>
    %c0_40 = arith.constant 0 : index
    %c0_41 = arith.constant 0 : index
    %c0_42 = arith.constant 0 : index
    %73 = vector.load %arg17[%c0_40, %c0_41, %c0_42] : memref<1x8x32xbf16, #tpu.memory_space<vmem>>, vector<1x8x32xbf16>
    %74 = vector.shape_cast %73 : vector<1x8x32xbf16> to vector<8x32xbf16>
    %75 = vector.shape_cast %72 : vector<8x32xbf16> to vector<1x8x32xbf16>
    tpu.vector_store %arg17[%c0_40, %c0_41, %c0_42], %75 {strides = array<i32>} : memref<1x8x32xbf16, #tpu.memory_space<vmem>>, vector<1x8x32xbf16>,
    return
  }
  func.func @transform_0(%arg0: i32, %arg1: i32) -> (i32, i32, i32) {
    %c0_i32 = arith.constant 0 : i32
    %c0_i32_0 = arith.constant 0 : i32
    %c0_i32_1 = arith.constant 0 : i32
    return %arg0, %c0_i32, %c0_i32_0 : i32, i32, i32
  }
  func.func @transform_1(%arg0: i32, %arg1: i32) -> (i32, i32) {
    %c0_i32 = arith.constant 0 : i32
    %c0_i32_0 = arith.constant 0 : i32
    %c0_i32_1 = arith.constant 0 : i32
    return %c0_i32, %c0_i32_0 : i32, i32
  }
  func.func @transform_2(%arg0: i32, %arg1: i32) -> (i32, i32) {
    %c0_i32 = arith.constant 0 : i32
    %c0_i32_0 = arith.constant 0 : i32
    %c0_i32_1 = arith.constant 0 : i32
    return %c0_i32, %c0_i32_0 : i32, i32
  }
  func.func @transform_3(%arg0: i32, %arg1: i32) -> (i32, i32, i32) {
    %c0_i32 = arith.constant 0 : i32
    %c0_i32_0 = arith.constant 0 : i32
    %c0_i32_1 = arith.constant 0 : i32
    %c0_i32_2 = arith.constant 0 : i32
    return %c0_i32, %c0_i32_0, %c0_i32_1 : i32, i32, i32
  }
  func.func @transform_4(%arg0: i32, %arg1: i32) -> (i32, i32) {
    %c0_i32 = arith.constant 0 : i32
    %c0_i32_0 = arith.constant 0 : i32
    %c0_i32_1 = arith.constant 0 : i32
    return %c0_i32, %c0_i32_0 : i32, i32
  }
  func.func @transform_5(%arg0: i32, %arg1: i32) -> (i32, i32) {
    %c0_i32 = arith.constant 0 : i32
    %c0_i32_0 = arith.constant 0 : i32
    %c0_i32_1 = arith.constant 0 : i32
    return %c0_i32, %c0_i32_0 : i32, i32
  }
  func.func @transform_6(%arg0: i32, %arg1: i32) -> (i32, i32) {
    %c0_i32 = arith.constant 0 : i32
    %c0_i32_0 = arith.constant 0 : i32
    %c0_i32_1 = arith.constant 0 : i32
    return %c0_i32, %c0_i32_0 : i32, i32
  }
  func.func @transform_7(%arg0: i32, %arg1: i32) -> (i32, i32) {
    %c0_i32 = arith.constant 0 : i32
    %c0_i32_0 = arith.constant 0 : i32
    %c0_i32_1 = arith.constant 0 : i32
    return %c0_i32, %c0_i32_0 : i32, i32
  }
  func.func @transform_8(%arg0: i32, %arg1: i32) -> (i32, i32) {
    %c0_i32 = arith.constant 0 : i32
    %c0_i32_0 = arith.constant 0 : i32
    %c0_i32_1 = arith.constant 0 : i32
    return %c0_i32, %c0_i32_0 : i32, i32
  }
  func.func @transform_9(%arg0: i32, %arg1: i32) -> (i32, i32) {
    %c0_i32 = arith.constant 0 : i32
    %c0_i32_0 = arith.constant 0 : i32
    %c0_i32_1 = arith.constant 0 : i32
    return %c0_i32, %c0_i32_0 : i32, i32
  }
  func.func @transform_10(%arg0: i32, %arg1: i32) -> (i32, i32) {
    %c0_i32 = arith.constant 0 : i32
    %c0_i32_0 = arith.constant 0 : i32
    %c0_i32_1 = arith.constant 0 : i32
    return %c0_i32, %c0_i32_0 : i32, i32
  }
  func.func @transform_11(%arg0: i32, %arg1: i32) -> (i32, i32) {
    %c0_i32 = arith.constant 0 : i32
    %c0_i32_0 = arith.constant 0 : i32
    %c0_i32_1 = arith.constant 0 : i32
    return %c0_i32, %c0_i32_0 : i32, i32
  }
  func.func @transform_12(%arg0: i32, %arg1: i32) -> (i32, i32) {
    %c0_i32 = arith.constant 0 : i32
    %c0_i32_0 = arith.constant 0 : i32
    %c0_i32_1 = arith.constant 0 : i32
    return %c0_i32, %c0_i32_0 : i32, i32
  }
  func.func @transform_13(%arg0: i32, %arg1: i32) -> (i32, i32) {
    %c0_i32 = arith.constant 0 : i32
    %c0_i32_0 = arith.constant 0 : i32
    %c0_i32_1 = arith.constant 0 : i32
    return %c0_i32, %c0_i32_0 : i32, i32
  }
  func.func @transform_14(%arg0: i32, %arg1: i32) -> (i32, i32) {
    %c0_i32 = arith.constant 0 : i32
    %c0_i32_0 = arith.constant 0 : i32
    %c0_i32_1 = arith.constant 0 : i32
    return %c0_i32, %c0_i32_0 : i32, i32
  }
  func.func @transform_15(%arg0: i32, %arg1: i32) -> (i32, i32, i32) {
    %c0_i32 = arith.constant 0 : i32
    %c0_i32_0 = arith.constant 0 : i32
    return %arg0, %arg1, %c0_i32 : i32, i32, i32
  }
}

</mosaic_0001>

<bundles_post_ra>
// kernel: tpu_custom_call.1
= control target key start
LH: loop header
LB: loop body
LE: loop exit
PB: predicated region body
PF: predicated region fallthrough
CT: control target
= control target key end

     0   :  { %s2703_s0 = inlined_call_operand.vmem [shape: f32[2,8,32], index: 0, kind: input, shape index: {}]   ;;  %s2704_s1 = inlined_call_operand.vmem [shape: bf16[32,96], index: 1, kind: input, shape index: {}]   ;;  %s2705_s2 = inlined_call_operand.vmem [shape: f32[1,96], index: 2, kind: input, shape index: {}]   ;;  %s2706_s3 = inlined_call_operand.vmem [shape: bf16[4,8,32], index: 3, kind: input, shape index: {}]   ;;  %s2707_s4 = inlined_call_operand.vmem [shape: f32[1,32], index: 4, kind: input, shape index: {}]   ;;  %s2708_s5 = inlined_call_operand.hbm [shape: f32[1,32], index: 5, kind: input, shape index: {}]   ;;  %s2709_s6 = inlined_call_operand.hbm [shape: f32[1,32], index: 6, kind: input, shape index: {}]   ;;  %s2710_s7 = inlined_call_operand.hbm [shape: f32[1,32], index: 7, kind: input, shape index: {}]   ;;  %s2711_s8 = inlined_call_operand.hbm [shape: f32[1,32], index: 8, kind: input, shape index: {}]   ;;  %s2712_s9 = inlined_call_operand.vmem [shape: bf16[32,64], index: 9, kind: input, shape index: {}]   ;;  %s2713_s10 = inlined_call_operand.vmem [shape: f32[1,64], index: 10, kind: input, shape index: {}]   ;;  %s2714_s11 = inlined_call_operand.vmem [shape: bf16[64,32], index: 11, kind: input, shape index: {}]   ;;  %s2715_s12 = inlined_call_operand.vmem [shape: f32[1,32], index: 12, kind: input, shape index: {}]   ;;  %s2716_s13 = inlined_call_operand.vmem [shape: f32[1,32], index: 13, kind: input, shape index: {}]   ;;  %s2717_s14 = inlined_call_operand.vmem [shape: f32[1,32], index: 14, kind: input, shape index: {}]   ;;  %s2718_s15 = inlined_call_operand.hbm [shape: bf16[2,8,32], index: 15, kind: output, shape index: {}]  }
   0x1   :  { %2733 = sst [smem:[#allocation26_spill]] %s2709_s6 }
   0x2   :  { %2734 = sst [smem:[#allocation27_spill]] %s2718_s15 }
   0x3   :  { %20 = vsyncpa [#allocation6], 0 }
   0x4   :  { %21 = vsyncpa [#allocation9], 0 }
   0x5   :  { %22 = vsyncpa [#allocation12], 0 }
   0x6   :  { %23 = vsyncpa [#allocation7], 0 }
   0x7   :  { %25 = vsyncpa [#allocation7 + $0x1], 0  ;;  %s2304_s18 = smov 0   ;;  %s2306_s19 = smov 0  }
   0x8   :  { %s2308_s20 = smov 0   ;;  %s2310_s21 = smov 0  }
   0x9   :  { %s2312_s13 = smov 0   ;;  %s2314_s22 = smov 0  }
   0xa LB: > { %2735 = sst [smem:[#allocation18_spill]] %s2184_s18  ;;  %s1678_s14 = sadd.s32 4294967295, %s2204_s22   ;;  %s2204_s22 = sphi %s2314_s22, %s31_s22   ;;  %s2200_s13 = sphi %s2312_s13, %s2762_s13   ;;  %s2196_s21 = sphi %s2310_s21, %s2761_s21   ;;  %s2192_s20 = sphi %s2308_s20, %s2765_s20   ;;  %s2188_s19 = sphi %s2306_s19, %s2764_s19   ;;  %s2184_s18 = sphi %s2304_s18, %s2763_s18  }
   0xb   : > { %2736 = sst [smem:[#allocation19_spill]] %s2192_s20  ;;  %s1679_s23 = sadd.s32 4294967294, %s2204_s22  }
   0xc   : > { %2737 = sst [smem:[#allocation20_spill]] %s2200_s13  ;;  %s43_s24 = sadd.s32 1, %s2200_s13 }
   0xd   : > { %2738 = sst [smem:[#allocation21_spill]] %s2204_s22  ;;  %s372_s25 = sadd.s32 1, %s2192_s20 }
   0xe   : > { %p45_p0 = scmp.ge.s32.totalorder %s43_s24, 2  ;;  %p382_p1 = scmp.ne.s32.totalorder %s2192_s20, %s2188_s19 }
   0xf   : > { %p383_p2 = scmp.eq.s32.totalorder %s1678_s14, 1  ;;  %p388_p3 = scmp.ne.s32.totalorder %s2188_s19, %s2184_s18 }
  0x10   : > { %s2767_s24 = smov (%p45_p0, %s43_s24), 0  ;;  %p389_p5 = scmp.eq.s32.totalorder %s1679_s23, 1 }
  0x11   : > { %2739 = sst [smem:[#allocation22_spill]] %s2767_s24  ;;  %p2344_p4 = por %p383_p2, %p382_p1 }
  0x12   : > { %s367_s27 = ssub.s32 %s2200_s13, %s2767_s24  ;;  %p1680_p6 = scmp.ge.s32.totalorder %s2204_s22, 1 }
  0x13   : > { %s2740_s26 = scalar_select %p2344_p4, 1, 0 }
  0x14   : > { %p370_p7 = scmp.eq.s32.totalorder %s367_s27, 0  ;;  %p2351_p8 = por %p389_p5, %p388_p3 }
  0x15   : > { %2741 = sst [smem:[#allocation23_spill]] %s2740_s26  ;;  %p396_p9 = scmp.lt.s32.totalorder %s2204_s22, 3 }
  0x16   : > { %s2742_s28 = scalar_select %p2351_p8, 1, 0 }
  0x17   : > { %s2357_s29 = scalar_select %p370_p7, %s2192_s20, %s372_s25  }
  0x18   : > { %2743 = sst [smem:[#allocation24_spill]] %s2742_s28  ;;  %p2359_p10 = pnand %p1680_p6, %p396_p9 }
  0x19   : > { %2744 = sst [smem:[#allocation25_spill]] %s2357_s29  ;;  %p2363_p11 = scmp.eq.s32.totalorder %s1678_s14, 0 }
  0x1a   : > { %s2745_s30 = scalar_select %p2359_p10, 1, 0 }
  0x1b   : > { %s2746_s16 = scalar_select %p2363_p11, 1, 0 }
  0x1c   : > { %p1883_p12 = pneg %p2359_p10  ;;  %s2206_s17 = smov [#allocation8]  }
  0x1d   : > { %s432_s23 = sshll.u32 %s2206_s17, 4  ;;  %s2207_s25 = smov [#allocation5]   ;;  %s433_s23 = int_to_ptr.vmem [resolvable:$true] %s432_s23 }
  0x1e   : > { %p2371_p13 = pnand %p2363_p11, %p1883_p12  ;;  %s421_s24 = sshll.u32 %s2207_s25, 4  ;;  %s2375_s24 = int_to_ptr.vmem [resolvable:$true] %s421_s24 }
  0x1f   : > { %s2748_s6 = sld [smem:[#allocation26_spill]] }
  0x20   : > { %p2385_p1 = pneg %p2371_p13 }
  0x25   : > { %s2002_s29 = scalar_lea.hbm %s2748_s6, 16 }
  0x26   : > { %p2003_p0 = scmp.ne.s32.totalorder %s2748_s6, %s2002_s29  ;;  %p2009_p5 = scmp.lt.u32.totalorder %s2002_s29, %s2748_s6 }
  0x28   : > { %p2005_p2 = pnand %p2385_p1, %p2003_p0 }
  0x2a   : > { %p2006_p3 = pneg %p2005_p2 }
  0x2c   : > { %p2011_p6 = pnand %p2009_p5, %p2006_p3 }
  0x2e   : > { %2014 = shalt.err (!%p2011_p6)
}
  0x2f   : > { %s2015_s13 = scalar_lea.vmem %s433_s23, 16  ;;  %s2022_s20 = scalar_lea.vmem %s433_s23, 32 }
  0x30   : > { %p2016_p7 = scmp.ne.s32.totalorder %s433_s23, %s2015_s13  ;;  %p2023_p8 = scmp.lt.s32.totalorder %s433_s23, %s433_s23 }
  0x31   : > { %p2024_p4 = scmp.lt.s32.totalorder %s2022_s20, %s2015_s13 }
  0x32   : > { %p2018_p9 = pnand %p2016_p7, %p2385_p1 }
  0x33   : > { %p2025_p11 = por %p2024_p4, %p2023_p8 }
  0x34   : > { %p2019_p12 = pneg %p2018_p9 }
  0x36   : > { %p2026_p10 = pnand %p2025_p11, %p2019_p12 }
  0x38   : > { %2029 = shalt.err (!%p2026_p10)
}
  0x39   : > { %1889 = dma.hbm_to_vmem [thread:$0]  (!%p2371_p13), %s2748_s6, 16, %s433_s23, [#allocation9]  }
  0x3a   : > { %s2030_s25 = scalar_lea.hbm %s2708_s5, 16 }
  0x3b   : > { %p2031_p0 = scmp.ne.s32.totalorder %s2708_s5, %s2030_s25  ;;  %p2037_p8 = scmp.lt.u32.totalorder %s2030_s25, %s2708_s5 }
  0x3d   : > { %p2033_p2 = pnand %p2031_p0, %p2385_p1 }
  0x3f   : > { %p2034_p4 = pneg %p2033_p2 }
  0x41   : > { %p2039_p10 = pnand %p2037_p8, %p2034_p4 }
  0x43   : > { %2042 = shalt.err (!%p2039_p10)
}
  0x44   : > { %s2043_s23 = scalar_lea.vmem %s2375_s24, 16  ;;  %s2050_s15 = scalar_lea.vmem %s2375_s24, 32 }
  0x45   : > { %p2044_p11 = scmp.ne.s32.totalorder %s2375_s24, %s2043_s23  ;;  %p2051_p6 = scmp.lt.s32.totalorder %s2375_s24, %s2375_s24 }
  0x46   : > { %p2052_p7 = scmp.lt.s32.totalorder %s2050_s15, %s2043_s23 }
  0x47   : > { %p2046_p3 = pnand %p2044_p11, %p2385_p1 }
  0x48   : > { %p2053_p9 = por %p2052_p7, %p2051_p6 }
  0x49   : > { %p2047_p5 = pneg %p2046_p3 }
  0x4b   : > { %p2054_p12 = pnand %p2053_p9, %p2047_p5 }
  0x4d   : > { %2057 = shalt.err (!%p2054_p12)
}
  0x4e   : > { %1886 = dma.hbm_to_vmem [thread:$0]  (!%p2371_p13), %s2708_s5, 16, %s2375_s24, [#allocation6]  }
  0x4f   : > { %s2208_s14 = smov [#allocation10]   ;;  %s2209_s29 = smov [#allocation11]  }
  0x50   : > { %s443_s18 = sshll.u32 %s2208_s14, 4  ;;  %s454_s25 = sshll.u32 %s2209_s29, 4  ;;  %s444_s18 = int_to_ptr.vmem [resolvable:$true] %s443_s18  ;;  %s455_s25 = int_to_ptr.vmem [resolvable:$true] %s454_s25 }
  0x51   : > { %s2058_s23 = scalar_lea.hbm %s2710_s7, 16 }
  0x52   : > { %p2059_p0 = scmp.ne.s32.totalorder %s2710_s7, %s2058_s23  ;;  %p2065_p8 = scmp.lt.u32.totalorder %s2058_s23, %s2710_s7 }
  0x54   : > { %p2061_p2 = pnand %p2059_p0, %p2385_p1 }
  0x56   : > { %p2062_p4 = pneg %p2061_p2 }
  0x58   : > { %p2067_p10 = pnand %p2065_p8, %p2062_p4 }
  0x5a   : > { %2070 = shalt.err (!%p2067_p10)
}
  0x5b   : > { %s2071_s24 = scalar_lea.vmem %s444_s18, 16  ;;  %s2078_s28 = scalar_lea.vmem %s444_s18, 32 }
  0x5c   : > { %p2072_p11 = scmp.ne.s32.totalorder %s444_s18, %s2071_s24  ;;  %p2079_p6 = scmp.lt.s32.totalorder %s444_s18, %s444_s18 }
  0x5d   : > { %p2080_p7 = scmp.lt.s32.totalorder %s2078_s28, %s2071_s24 }
  0x5e   : > { %p2074_p3 = pnand %p2072_p11, %p2385_p1 }
  0x5f   : > { %p2081_p9 = por %p2080_p7, %p2079_p6 }
  0x60   : > { %p2075_p5 = pneg %p2074_p3 }
  0x62   : > { %p2082_p12 = pnand %p2081_p9, %p2075_p5 }
  0x64   : > { %2085 = shalt.err (!%p2082_p12)
}
  0x65   : > { %1892 = dma.hbm_to_vmem [thread:$0]  (!%p2371_p13), %s2710_s7, 16, %s444_s18, [#allocation9]  }
  0x66   : > { %s2086_s13 = scalar_lea.hbm %s2711_s8, 16 }
  0x67   : > { %p2087_p0 = scmp.ne.s32.totalorder %s2711_s8, %s2086_s13  ;;  %p2093_p8 = scmp.lt.u32.totalorder %s2086_s13, %s2711_s8 }
  0x69   : > { %p2089_p2 = pnand %p2087_p0, %p2385_p1 }
  0x6b   : > { %p2090_p4 = pneg %p2089_p2 }
  0x6d   : > { %p2095_p10 = pnand %p2093_p8, %p2090_p4 }
  0x6f   : > { %2098 = shalt.err (!%p2095_p10)
}
  0x70   : > { %s2099_s24 = scalar_lea.vmem %s455_s25, 16  ;;  %s2106_s18 = scalar_lea.vmem %s455_s25, 32 }
  0x71   : > { %p2100_p11 = scmp.ne.s32.totalorder %s455_s25, %s2099_s24  ;;  %p2107_p6 = scmp.lt.s32.totalorder %s455_s25, %s455_s25 }
  0x72   : > { %p2108_p7 = scmp.lt.s32.totalorder %s2106_s18, %s2099_s24 }
  0x73   : > { %p2102_p3 = pnand %p2100_p11, %p2385_p1 }
  0x74   : > { %p2109_p9 = por %p2108_p7, %p2107_p6 }
  0x75   : > { %p2103_p5 = pneg %p2102_p3 }
  0x77   : > { %p2110_p12 = pnand %p2109_p9, %p2103_p5 }
  0x79   : > { %2113 = shalt.err (!%p2110_p12)
}
  0x7a   : > { %1895 = dma.hbm_to_vmem [thread:$0]  (!%p2371_p13), %s2711_s8, 16, %s455_s25, [#allocation12]  }
  0x7b   : > { %p2750_p0 = scmp.ne.s32.totalorder %s2745_s30, 0 }
  0x7c   : > { %p2751_p2 = scmp.ne.s32.totalorder (!%p2750_p0), %s2746_s16, 0 }
  0x7d   : > { %492 = sbr.rel (%p2750_p0) target bundleno = 2397 (0x95d), region = 80 }
  0x84   : > { %2167 = dma.done.wait (%p2751_p2), [#allocation6], 16  }
  0x85   : > { %2169 = vsyncadd (%p2751_p2), [#allocation6], 4294967280 }
  0x86   : > { %2171 = dma.done.wait (%p2751_p2), [#allocation9], 32  }
  0x87   : > { %2173 = vsyncadd (%p2751_p2), [#allocation9], 4294967264 }
  0x88   : > { %2175 = dma.done.wait (%p2751_p2), [#allocation12], 16  }
  0x89   : > { %2177 = vsyncadd (%p2751_p2), [#allocation12], 4294967280  ;;  %p551_p13 = scmp.lt.s32.totalorder %s2196_s21, 1  ;;  %vm563_vm0 = vcmask 261120   ;;  %v1974_v7 = vld [vmem:[%s2704_s1] sm:$0xff]   ;;  %v2210_v8 = vmov 0.0  }
  0x8a   : > { %1765 = vmatprep.subr.bf16.mxu1 %v2210_v8  ;;  %vm2211_vm1 = vmmov 0   ;;  %v1975_v9 = vld [vmem:[%s2704_s1 + $0x8] sm:$0xff]   ;;  %1779 = vmatprep.subr.bf16.mxu0 %v2210_v8  ;;  %v1693_v14 = vld [vmem:[#allocation5] ss:$0 sm:$0xff]  ;;  %v1694_v16 = vld [vmem:[#allocation8] ss:$0 sm:$0xff] }
  0x8b   : > { %s552_s30 = scalar_select %p551_p13, %s2196_s21, 1  ;;  %1769 = vmatprep.mubr.msk.bf16.mxu1 %vm2211_vm1, %v2210_v8  ;;  %1766 = vmatpush3.bf16.msra.mxu1 %v1974_v7  ;;  %v1695_v20 = vld [vmem:[%s2705_s2] ss:$0 sm:$0xff]  ;;  %vm660_vm2 = vcmask 60416   ;;  %vm733_vm3 = vcmask 64512   ;;  %vm965_vm4 = vcmask 1043456  }
  0x8c   : > { %1767 = vmatprep.subr.bf16.mxu1 %v2210_v8  ;;  %1781 = vmatprep.mubr.msk.bf16.mxu0 %vm2211_vm1, %v2210_v8  ;;  %s2212_s15 = smov 80   ;;  %s2213_s22 = smov 96   ;;  %vm1502_vm5 = vcmask 523264   ;;  %vm1548_vm6 = vcmask 257024  }
  0x8d   : > { %s1692_s27 = sshll.u32 %s552_s30, 3  ;;  %s2214_s24 = smov 88  }
  0x8e   : > { %s554_s14 = scalar_lea.vmem %s2703_s0, %s1692_s27  ;;  %s2215_s18 = smov 120  }
  0x8f   : > { %v2480_v0 = vld [vmem:[%s554_s14] sm:$0xff]  ;;  %1768 = vmatpush3.bf16.msra.mxu1 %v1975_v9  ;;  %s2216_s28 = smov 72   ;;  %s2217_s6 = smov 112  }
  0x90   : > { %v564_v1 = vsel %vm563_vm0, %v2480_v0, 0.0  ;;  %1773 = vmatprep.subr.bf16.mxu1 %v2210_v8  ;;  %s2218_s30 = smov 104   ;;  %s2219_s27 = smov 64  }
  0x91   : > { %565 = vadd.xlane.f32.xlu0 %v564_v1  ;;  %s2220_s17 = smov 48   ;;  %s2221_s25 = smov 40  }
  0x92   : > { %s2222_s14 = smov 56   ;;  %s2753_s16 = sld [smem:[#allocation27_spill]] }
 0x11e   : > { %v566_v2 = vpop.xlane.xlu0 %565 }
 0x11f   : > { %v568_v3 = vmul.f32 0.03125, %v566_v2 }
 0x121   : > { %v569_v4 = vsub.f32 %v2480_v0, %v568_v3 }
 0x123   : > { %v570_v5 = vmul.f32 %v569_v4, %v569_v4 }
 0x125   : > { %v571_v6 = vsel %vm563_vm0, %v570_v5, 0.0 }
 0x126   : > { %572 = vadd.xlane.f32.xlu0 %v571_v6 }
 0x1b3   : > { %v573_v10 = vpop.xlane.xlu0 %572 }
 0x1b4   : > { %v574_v11 = vmul.f32 0.03125, %v573_v10 }
 0x1b6   : > { %v575_v12 = vadd.f32 1e-05, %v574_v11 }
 0x1b8   : > { %1982 = vrsqrt.f32 %v575_v12 }
 0x1c2   : > { %v1983_v13 = vpop.eup %1982 }
 0x1c3   : > { %v577_v15 = vmul.f32 %v1983_v13, %v569_v4 }
 0x1c5   : > { %v584_v17 = vmul.f32 %v1693_v14, %v577_v15 }
 0x1c7   : > { %v591_v18 = vadd.f32 %v1694_v16, %v584_v17 }
 0x1c9   : > { %v592_v19 = vpack.c.bf16 %v591_v18, %v591_v18 }
 0x1cb   : > { %1770 = vmatmul.mubr.msk.bf16.vlgmr.msra.gmra.mrb[0].mxu1 %vm563_vm0, %v592_v19 }
 0x1cc   : > { %1775 = vmatprep.mubr.msk.bf16.mxu1 %vm2211_vm1, %v2210_v8 }
 0x29e   : > { %v653_v21 = vpop.f32.mrb[0].mxu1 }
 0x29f   : > { %v654_v22 = vadd.f32 %v1695_v20, %v653_v21  ;;  %v1771_v23 = vpop.f32.mrb[1].mxu1 }
 0x2a0   : > { %v656_v24 = vpop.f32.mrb[2].mxu1 }
 0x2a1   : > { %v2506_v25 = vpack.c.bf16 %v654_v22, %v654_v22  ;;  %v1772_v26 = vpop.f32.mrb[3].mxu1 }
 0x2a3   : > { %693 = vrot.lane.b32.xlu0 %v2506_v25, %s2212_s15  ;;  %665 = vrot.lane.b32.xlu1 %v2506_v25, %s2213_s22  ;;  %661 = vst.msk [vmem:[#allocation2] sm:$0xf] %vm660_vm2, %v2506_v25  ;;  %s548_s22 = sand.u32 1, %s2188_s19  }
 0x2a4   : > { %s1551_s29 = scalar_lea.sflag [#allocation7], %s548_s22 }
 0x2a7   : > { %678 = vrot.lane.b32.xlu1 %v2506_v25, %s2214_s24  ;;  %s1691_s24 = sshll.u32 %s548_s22, 2 }
 0x2aa   : > { %v725_v38 = vld [vmem:[#allocation2] sm:$0xf] }
 0x2ab   : > { %673 = vrot.lane.b32.xlu1 %v2506_v25, %s2215_s18 }
 0x2af   : > { %708 = vrot.lane.b32.xlu1 %v2506_v25, %s2216_s28 }
 0x2b3   : > { %688 = vrot.lane.b32.xlu1 %v2506_v25, %s2217_s6  ;;  %s2752_s6 = sld [smem:[#allocation23_spill]] }
 0x2b7   : > { %703 = vrot.lane.b32.xlu1 %v2506_v25, %s2218_s30  ;;  %s1726_s30 = sshll.u32 %s2196_s21, 6  ;;  %s2223_s21 = smov [#allocation13]  }
 0x2b8   : > { %s2656_s26 = scalar_lea.hbm %s2753_s16, %s1726_s30  ;;  %s2118_s20 = sshll.u32 %s2223_s21, 4  ;;  %s2119_s20 = int_to_ptr.vmem [resolvable:$false] %s2118_s20 }
 0x2b9   : > { %p2754_p4 = scmp.ne.s32.totalorder %s2752_s6, 0  ;;  %s2120_s23 = scalar_lea.vmem %s2119_s20, 128 }
 0x2bb   : > { %669 = vrot.lane.b32.xlu1 %v2506_v25, %s2219_s27  ;;  %s550_s27 = scalar_lea.vmem [#allocation13], %s1691_s24 }
 0x315   : > { %v694_v27 = vpop.permute.xlu0 %693  ;;  %v666_v28 = vpop.permute.xlu1 %665 }
 0x316   : > { %697 = vst.msk [vmem:[#allocation3 + $0x8] sm:$0xf] %vm660_vm2, %v694_v27  ;;  %668 = vst.msk [vmem:[#allocation3] sm:$0xf] %vm660_vm2, %v666_v28 }
 0x319   : > { %v679_v29 = vpop.permute.xlu1 %678 }
 0x31a   : > { %682 = vst.msk [vmem:[#allocation3 + $0x4] sm:$0xf] %vm660_vm2, %v679_v29 }
 0x31d   : > { %v674_v30 = vpop.permute.xlu1 %673  ;;  %v729_v31 = vld [vmem:[#allocation3] sm:$0xf]  ;;  %v731_v36 = vld [vmem:[#allocation3 + $0x8] sm:$0xf] }
 0x31e   : > { %677 = vst.msk [vmem:[#allocation2 + $0x4] sm:$0xf] %vm660_vm2, %v674_v30  ;;  %v738_v32 = vsel %vm733_vm3, %v729_v31, 0  ;;  %v830_v39 = vsel %vm733_vm3, %v731_v36, 0 }
 0x31f   : > { %1774 = vmatpush3.bf16.xpose.msra.mxu1 %v738_v32 }
 0x320   : > { %1785 = vmatprep.subr.bf16.mxu1 %v2210_v8 }
 0x321   : > { %v709_v33 = vpop.permute.xlu1 %708  ;;  %v730_v34 = vld [vmem:[#allocation3 + $0x4] sm:$0xf] }
 0x322   : > { %712 = vst.msk [vmem:[#allocation3 + $0xc] sm:$0xf] %vm660_vm2, %v709_v33  ;;  %v784_v35 = vsel %vm733_vm3, %v730_v34, 0 }
 0x323   : > { %1780 = vmatpush3.bf16.xpose.msra.mxu0 %v784_v35 }
 0x324   : > { %1791 = vmatprep.subr.bf16.mxu0 %v2210_v8 }
 0x325   : > { %v689_v37 = vpop.permute.xlu1 %688  ;;  %v726_v41 = vld [vmem:[#allocation2 + $0x4] sm:$0xf] }
 0x326   : > { %692 = vst.msk [vmem:[#allocation2 + $0x8] sm:$0xf] %vm660_vm2, %v689_v37  ;;  %1776 = vmatmul.mubr.msk.bf16.vlgmr.msra.gmra.mrb[4].mxu1 %vm733_vm3, %v725_v38 }
 0x327   : > { %1786 = vmatpush3.bf16.xpose.msra.mxu1 %v830_v39  ;;  %1787 = vmatprep.mubr.msk.bf16.mxu1 %vm2211_vm1, %v2210_v8 }
 0x328   : > { %1797 = vmatprep.subr.bf16.mxu1 %v2210_v8 }
 0x329   : > { %v704_v40 = vpop.permute.xlu1 %703  ;;  %v732_v42 = vld [vmem:[#allocation3 + $0xc] sm:$0xf] }
 0x32a   : > { %707 = vst.msk [vmem:[#allocation2 + $0xc] sm:$0xf] %vm660_vm2, %v704_v40  ;;  %1782 = vmatmul.mubr.msk.bf16.vlgmr.msra.gmra.mrb[0].mxu0 %vm733_vm3, %v726_v41  ;;  %v876_v43 = vsel %vm733_vm3, %v732_v42, 0  ;;  %v1159_v40 = vld [vmem:[%s2706_s3] sm:$0xf] }
 0x32b   : > { %1792 = vmatpush3.bf16.xpose.msra.mxu0 %v876_v43  ;;  %1793 = vmatprep.mubr.msk.bf16.mxu0 %vm2211_vm1, %v2210_v8  ;;  %v1167_v41 = vsel %vm965_vm4, %v1159_v40, 0  ;;  %v1160_v42 = vld [vmem:[%s2706_s3 + $0x4] sm:$0xf] }
 0x32c   : > { %1803 = vmatprep.subr.bf16.mxu0 %v2210_v8  ;;  %v1213_v43 = vsel %vm965_vm4, %v1160_v42, 0 }
 0x32d   : > { %v670_v44 = vpop.permute.xlu1 %669  ;;  %v727_v45 = vld [vmem:[#allocation2 + $0x8] sm:$0xf] }
 0x32e   : > { %672 = vst.msk [vmem:[#allocation4] sm:$0xf] %vm660_vm2, %v670_v44  ;;  %1788 = vmatmul.mubr.msk.bf16.vlgmr.msra.gmra.mrb[8].mxu1 %vm733_vm3, %v727_v45 }
 0x32f   : > { %1799 = vmatprep.mubr.msk.bf16.mxu1 %vm2211_vm1, %v2210_v8 }
 0x331   : > { %v728_v46 = vld [vmem:[#allocation2 + $0xc] sm:$0xf] }
 0x332   : > { %1794 = vmatmul.mubr.msk.bf16.vlgmr.msra.gmra.mrb[4].mxu0 %vm733_vm3, %v728_v46 }
 0x333   : > { %1805 = vmatprep.mubr.msk.bf16.mxu0 %vm2211_vm1, %v2210_v8 }
 0x335   : > { %v958_v47 = vld [vmem:[#allocation4] sm:$0xf] }
 0x336   : > { %v967_v48 = vsel %vm965_vm4, %v958_v47, 0 }
 0x337   : > { %1798 = vmatpush3.bf16.msra.mxu1 %v967_v48 }
 0x338   : > { %1809 = vmatprep.subr.bf16.mxu1 %v2210_v8 }
 0x3f9   : > { %v774_v49 = vpop.f32.mrb[4].mxu1 }
 0x3fa   : > { %v1777_v50 = vpop.f32.mrb[5].mxu1  ;;  %v918_v51 = vsel %vm733_vm3, %v774_v49, -inf }
 0x3fb   : > { %919 = vmax.xlane.f32.xlu1 %v918_v51  ;;  %v777_v52 = vpop.f32.mrb[6].mxu1 }
 0x3fc   : > { %v1778_v53 = vpop.f32.mrb[7].mxu1 }
 0x3fd   : > { %v820_v54 = vpop.f32.mrb[0].mxu0 }
 0x3fe   : > { %v1783_v55 = vpop.f32.mrb[1].mxu0  ;;  %v921_v56 = vsel %vm733_vm3, %v820_v54, -inf }
 0x3ff   : > { %922 = vmax.xlane.f32.xlu0 %v921_v56  ;;  %v823_v57 = vpop.f32.mrb[2].mxu0 }
 0x400   : > { %v1784_v58 = vpop.f32.mrb[3].mxu0 }
 0x401   : > { %v866_v59 = vpop.f32.mrb[8].mxu1 }
 0x402   : > { %v1789_v60 = vpop.f32.mrb[9].mxu1  ;;  %v924_v61 = vsel %vm733_vm3, %v866_v59, -inf }
 0x403   : > { %925 = vmax.xlane.f32.xlu1 %v924_v61  ;;  %v869_v62 = vpop.f32.mrb[10].mxu1 }
 0x404   : > { %v1790_v63 = vpop.f32.mrb[11].mxu1 }
 0x405   : > { %v912_v1 = vpop.f32.mrb[4].mxu0 }
 0x406   : > { %v1795_v2 = vpop.f32.mrb[5].mxu0  ;;  %v927_v3 = vsel %vm733_vm3, %v912_v1, -inf }
 0x407   : > { %928 = vmax.xlane.f32.xlu0 %v927_v3  ;;  %v915_v4 = vpop.f32.mrb[6].mxu0  ;;  %v1162_v3 = vld [vmem:[%s2706_s3 + $0xc] sm:$0xf] }
 0x408   : > { %v1796_v5 = vpop.f32.mrb[7].mxu0 }
 0x414   : > { %698 = vrot.lane.b32.xlu1 %v2506_v25, %s2220_s17  ;;  %s1565_s17 = sshll.u32 %s550_s27, 4  ;;  %s2658_s17 = int_to_ptr.vmem [resolvable:$true] %s1565_s17 }
 0x415   : > { %s2114_s13 = scalar_lea.vmem %s2658_s17, 64  ;;  %p2121_p11 = scmp.lt.s32.totalorder %s2658_s17, %s2119_s20 }
 0x416   : > { %p2115_p1 = scmp.ne.s32.totalorder %s2658_s17, %s2114_s13  ;;  %p2122_p3 = scmp.lt.s32.totalorder %s2120_s23, %s2114_s13 }
 0x418   : > { %713 = vrot.lane.b32.xlu1 %v2506_v25, %s2221_s25  ;;  %p2116_p8 = pnand %p2115_p1, %p2754_p4  ;;  %p2123_p5 = por %p2122_p3, %p2121_p11 }
 0x41a   : > { %p2117_p10 = pneg %p2116_p8 }
 0x41c   : > { %p2124_p6 = pnand %p2123_p5, %p2117_p10 }
 0x41d   : > { %683 = vrot.lane.b32.xlu0 %v2506_v25, %s2222_s14 }
 0x488   : > { %v920_v6 = vpop.xlane.xlu1 %919 }
 0x489   : > { %v930_v7 = vsub.f32 %v774_v49, %v920_v6  ;;  %v1161_v49 = vld [vmem:[%s2706_s3 + $0x8] sm:$0xf] }
 0x48a   : > { %v1259_v55 = vsel %vm965_vm4, %v1161_v49, 0 }
 0x48b   : > { %v934_v9 = vmul.f32 1.442695, %v930_v7 }
 0x48c   : > { %v923_v10 = vpop.xlane.xlu0 %922 }
 0x48d   : > { %1984 = vpow2.f32 %v934_v9  ;;  %v931_v11 = vsub.f32 %v820_v54, %v923_v10  ;;  %v1305_v10 = vsel %vm965_vm4, %v1162_v3, 0 }
 0x48f   : > { %v936_v12 = vmul.f32 1.442695, %v931_v11 }
 0x490   : > { %v926_v13 = vpop.xlane.xlu1 %925 }
 0x491   : > { %1986 = vpow2.f32 %v936_v12  ;;  %v932_v14 = vsub.f32 %v866_v59, %v926_v13 }
 0x493   : > { %v938_v15 = vmul.f32 1.442695, %v932_v14 }
 0x494   : > { %v929_v16 = vpop.xlane.xlu0 %928  ;;  %v699_v17 = vpop.permute.xlu1 %698 }
 0x495   : > { %1988 = vpow2.f32 %v938_v15  ;;  %v933_v18 = vsub.f32 %v912_v1, %v929_v16  ;;  %702 = vst.msk [vmem:[#allocation4 + $0x8] sm:$0xf] %vm660_vm2, %v699_v17 }
 0x497   : > { %v1985_v19 = vpop.eup %1984  ;;  %v940_v20 = vmul.f32 1.442695, %v933_v18 }
 0x498   : > { %v684_v21 = vpop.permute.xlu0 %683  ;;  %v714_v22 = vpop.permute.xlu1 %713  ;;  %v942_v23 = vsel %vm733_vm3, %v1985_v19, 0.0  ;;  %v954_v24 = vpack.c.bf16 %v1985_v19, %v1985_v19 }
 0x499   : > { %1990 = vpow2.f32 %v940_v20  ;;  %687 = vst.msk [vmem:[#allocation4 + $0x4] sm:$0xf] %vm660_vm2, %v684_v21  ;;  %717 = vst.msk [vmem:[#allocation4 + $0xc] sm:$0xf] %vm660_vm2, %v714_v22  ;;  %943 = vadd.xlane.f32.xlu0 %v942_v23 }
 0x49a   : > { %1800 = vmatmul.mubr.msk.bf16.vlgmr.msra.gmra.mrb[12].mxu1 %vm733_vm3, %v954_v24 }
 0x49b   : > { %v1987_v25 = vpop.eup %1986  ;;  %1811 = vmatprep.mubr.msk.bf16.mxu1 %vm2211_vm1, %v2210_v8 }
 0x49c   : > { %v945_v26 = vsel %vm733_vm3, %v1987_v25, 0.0  ;;  %v960_v27 = vld [vmem:[#allocation4 + $0x8] sm:$0xf]  ;;  %v955_v36 = vpack.c.bf16 %v1987_v25, %v1987_v25 }
 0x49d   : > { %946 = vadd.xlane.f32.xlu1 %v945_v26  ;;  %v1059_v28 = vsel %vm965_vm4, %v960_v27, 0 }
 0x49e   : > { %1810 = vmatpush3.bf16.msra.mxu1 %v1059_v28 }
 0x49f   : > { %v1989_v29 = vpop.eup %1988  ;;  %1821 = vmatprep.subr.bf16.mxu1 %v2210_v8 }
 0x4a0   : > { %v948_v30 = vsel %vm733_vm3, %v1989_v29, 0.0  ;;  %v959_v31 = vld [vmem:[#allocation4 + $0x4] sm:$0xf]  ;;  %v956_v32 = vpack.c.bf16 %v1989_v29, %v1989_v29  ;;  %v961_v34 = vld [vmem:[#allocation4 + $0xc] sm:$0xf] }
 0x4a1   : > { %949 = vadd.xlane.f32.xlu0 %v948_v30  ;;  %v1013_v33 = vsel %vm965_vm4, %v959_v31, 0  ;;  %v1105_v38 = vsel %vm965_vm4, %v961_v34, 0 }
 0x4a2   : > { %1804 = vmatpush3.bf16.msra.mxu0 %v1013_v33  ;;  %1812 = vmatmul.mubr.msk.bf16.vlgmr.msra.gmra.mrb[16].mxu1 %vm733_vm3, %v956_v32 }
 0x4a3   : > { %v1991_v35 = vpop.eup %1990  ;;  %1815 = vmatprep.subr.bf16.mxu0 %v2210_v8  ;;  %1823 = vmatprep.mubr.msk.bf16.mxu1 %vm2211_vm1, %v2210_v8 }
 0x4a4   : > { %v951_v37 = vsel %vm733_vm3, %v1991_v35, 0.0  ;;  %v957_v39 = vpack.c.bf16 %v1991_v35, %v1991_v35  ;;  %1822 = vmatpush3.bf16.msra.mxu1 %v1167_v41 }
 0x4a5   : > { %1806 = vmatmul.mubr.msk.bf16.vlgmr.msra.gmra.mrb[8].mxu0 %vm733_vm3, %v955_v36  ;;  %952 = vadd.xlane.f32.xlu0 %v951_v37  ;;  %v1712_v37 = vld [vmem:[%s2707_s4] ss:$0 sm:$0xff] }
 0x4a6   : > { %1816 = vmatpush3.bf16.msra.mxu0 %v1105_v38  ;;  %1817 = vmatprep.mubr.msk.bf16.mxu0 %vm2211_vm1, %v2210_v8 }
 0x4a7   : > { %1827 = vmatprep.subr.bf16.mxu0 %v2210_v8  ;;  %1833 = vmatprep.subr.bf16.mxu1 %v2210_v8 }
 0x4ad   : > { %1818 = vmatmul.mubr.msk.bf16.vlgmr.msra.gmra.mrb[12].mxu0 %vm733_vm3, %v957_v39 }
 0x4ae   : > { %1829 = vmatprep.mubr.msk.bf16.mxu0 %vm2211_vm1, %v2210_v8  ;;  %1828 = vmatpush3.bf16.msra.mxu0 %v1213_v43 }
 0x4af   : > { %1839 = vmatprep.subr.bf16.mxu0 %v2210_v8 }
 0x526   : > { %v944_v44 = vpop.xlane.xlu0 %943 }
 0x527   : > { %1992 = vrcp.f32 %v944_v44 }
 0x52a   : > { %v947_v46 = vpop.xlane.xlu1 %946 }
 0x52e   : > { %v950_v45 = vpop.xlane.xlu0 %949 }
 0x52f   : > { %1994 = vrcp.f32 %v950_v45 }
 0x530   : > { %1996 = vrcp.f32 %v947_v46 }
 0x531   : > { %v1993_v47 = vpop.eup %1992 }
 0x532   : > { %v953_v56 = vpop.xlane.xlu0 %952 }
 0x533   : > { %1998 = vrcp.f32 %v953_v56 }
 0x539   : > { %v1995_v57 = vpop.eup %1994 }
 0x53a   : > { %v1997_v62 = vpop.eup %1996 }
 0x53d   : > { %v1999_v11 = vpop.eup %1998 }
 0x56d   : > { %v1003_v48 = vpop.f32.mrb[12].mxu1 }
 0x56e   : > { %v1151_v50 = vmul.f32 %v1993_v47, %v1003_v48  ;;  %v1801_v51 = vpop.f32.mrb[13].mxu1 }
 0x56f   : > { %v1006_v52 = vpop.f32.mrb[14].mxu1  ;;  %v1978_v51 = vld [vmem:[%s2714_s11] sm:$0xff]  }
 0x570   : > { %v1155_v53 = vpack.c.bf16 %v1151_v50, %v1151_v50  ;;  %v1802_v54 = vpop.f32.mrb[15].mxu1  ;;  %v1976_v50 = vld [vmem:[%s2712_s9] sm:$0xff]   ;;  %v1979_v52 = vld [vmem:[%s2714_s11 + $0x8] sm:$0xff]  }
 0x572   : > { %1824 = vmatmul.mubr.msk.bf16.vlgmr.msra.gmra.mrb[20].mxu1 %vm733_vm3, %v1155_v53 }
 0x573   : > { %1834 = vmatpush3.bf16.msra.mxu1 %v1259_v55  ;;  %1835 = vmatprep.mubr.msk.bf16.mxu1 %vm2211_vm1, %v2210_v8 }
 0x574   : > { %1845 = vmatprep.subr.bf16.mxu1 %v2210_v8 }
 0x575   : > { %v1095_v58 = vpop.f32.mrb[16].mxu1 }
 0x576   : > { %v1153_v59 = vmul.f32 %v1995_v57, %v1095_v58  ;;  %v1813_v60 = vpop.f32.mrb[17].mxu1  ;;  %v1713_v57 = vld [vmem:[#allocation10] ss:$0 sm:$0xff] }
 0x577   : > { %v1098_v61 = vpop.f32.mrb[18].mxu1 }
 0x578   : > { %v1157_v63 = vpack.c.bf16 %v1153_v59, %v1153_v59  ;;  %v1049_v1 = vpop.f32.mrb[8].mxu0  ;;  %v1814_v2 = vpop.f32.mrb[19].mxu1  ;;  %v1714_v59 = vld [vmem:[#allocation11] ss:$0 sm:$0xff] }
 0x579   : > { %v1152_v4 = vmul.f32 %v1997_v62, %v1049_v1  ;;  %v1807_v5 = vpop.f32.mrb[9].mxu0  ;;  %v1981_v1 = vld [vmem:[%s2714_s11 + $0x18] sm:$0xff]   ;;  %v1715_v2 = vld [vmem:[%s2713_s10] ss:$0 sm:$0xff] }
 0x57a   : > { %v1052_v6 = vpop.f32.mrb[10].mxu0  ;;  %1836 = vmatmul.mubr.msk.bf16.vlgmr.msra.gmra.mrb[24].mxu1 %vm733_vm3, %v1157_v63  ;;  %v1980_v63 = vld [vmem:[%s2714_s11 + $0x10] sm:$0xff]  }
 0x57b   : > { %v1156_v7 = vpack.c.bf16 %v1152_v4, %v1152_v4  ;;  %v1808_v9 = vpop.f32.mrb[11].mxu0  ;;  %1849 = vmatprep.mubr.msk.bf16.mxu1 %vm2211_vm1, %v2210_v8  ;;  %1846 = vmatpush3.bf16.msra.mxu1 %v1976_v50 }
 0x57c   : > { %1847 = vmatprep.subr.bf16.mxu1 %v2210_v8 }
 0x57d   : > { %1830 = vmatmul.mubr.msk.bf16.vlgmr.msra.gmra.mrb[16].mxu0 %vm733_vm3, %v1156_v7 }
 0x57e   : > { %1840 = vmatpush3.bf16.msra.mxu0 %v1305_v10  ;;  %1841 = vmatprep.mubr.msk.bf16.mxu0 %vm2211_vm1, %v2210_v8 }
 0x57f   : > { %1853 = vmatprep.subr.bf16.mxu0 %v2210_v8 }
 0x580   : > { %v1141_v12 = vpop.f32.mrb[12].mxu0 }
 0x581   : > { %v1154_v13 = vmul.f32 %v1999_v11, %v1141_v12  ;;  %v1819_v14 = vpop.f32.mrb[13].mxu0 }
 0x582   : > { %v1144_v15 = vpop.f32.mrb[14].mxu0 }
 0x583   : > { %v1158_v16 = vpack.c.bf16 %v1154_v13, %v1154_v13  ;;  %v1820_v17 = vpop.f32.mrb[15].mxu0 }
 0x585   : > { %1842 = vmatmul.mubr.msk.bf16.vlgmr.msra.gmra.mrb[20].mxu0 %vm733_vm3, %v1158_v16 }
 0x586   : > { %1861 = vmatprep.mubr.msk.bf16.mxu0 %vm2211_vm1, %v2210_v8  ;;  %1854 = vmatpush3.bf16.msra.mxu0 %v1978_v51 }
 0x587   : > { %1855 = vmatprep.subr.bf16.mxu0 %v2210_v8 }
 0x58a   : > { %1856 = vmatpush3.bf16.msra.mxu0 %v1979_v52 }
 0x58b   : > { %1857 = vmatprep.subr.bf16.mxu0 %v2210_v8 }
 0x58e   : > { %1858 = vmatpush3.bf16.msra.mxu0 %v1980_v63 }
 0x58f   : > { %1859 = vmatprep.subr.bf16.mxu0 %v2210_v8  ;;  %v1719_v8 = vld [vmem:[%s2715_s12] ss:$0 sm:$0xff] }
 0x592   : > { %1860 = vmatpush3.bf16.msra.mxu0 %v1981_v1 }
 0x645   : > { %v1203_v18 = vpop.f32.mrb[20].mxu1 }
 0x646   : > { %v1825_v19 = vpop.f32.mrb[21].mxu1  ;;  %v1348_v27 = vsel %vm563_vm0, %v1203_v18, 0.0 }
 0x647   : > { %v1206_v20 = vpop.f32.mrb[22].mxu1 }
 0x648   : > { %v1826_v21 = vpop.f32.mrb[23].mxu1 }
 0x64d   : > { %v1295_v22 = vpop.f32.mrb[24].mxu1 }
 0x64e   : > { %v1837_v23 = vpop.f32.mrb[25].mxu1  ;;  %v1351_v32 = vsel %vm563_vm0, %v1295_v22, 0.0 }
 0x64f   : > { %v1298_v24 = vpop.f32.mrb[26].mxu1 }
 0x650   : > { %v1249_v25 = vpop.f32.mrb[16].mxu0  ;;  %v1838_v26 = vpop.f32.mrb[27].mxu1 }
 0x651   : > { %v1349_v28 = vsel %vm563_vm0, %v1249_v25, 0.0  ;;  %v1831_v29 = vpop.f32.mrb[17].mxu0 }
 0x652   : > { %v1350_v30 = vadd.f32 %v1349_v28, %v1348_v27  ;;  %v1252_v31 = vpop.f32.mrb[18].mxu0 }
 0x653   : > { %v1832_v33 = vpop.f32.mrb[19].mxu0 }
 0x654   : > { %v1352_v34 = vadd.f32 %v1351_v32, %v1350_v30 }
 0x658   : > { %v1341_v35 = vpop.f32.mrb[20].mxu0 }
 0x659   : > { %v1353_v36 = vsel %vm563_vm0, %v1341_v35, 0.0  ;;  %v1843_v38 = vpop.f32.mrb[21].mxu0 }
 0x65a   : > { %v1354_v39 = vadd.f32 %v1353_v36, %v1352_v34  ;;  %v1344_v40 = vpop.f32.mrb[22].mxu0 }
 0x65b   : > { %v1844_v41 = vpop.f32.mrb[23].mxu0 }
 0x65c   : > { %v1362_v42 = vadd.f32 %v1712_v37, %v1354_v39 }
 0x65e   : > { %v1363_v43 = vadd.f32 %v1362_v42, %v2480_v0  ;;  %v1977_v0 = vld [vmem:[%s2712_s9 + $0x8] sm:$0xff]  }
 0x65f   : > { %1848 = vmatpush3.bf16.msra.mxu1 %v1977_v0 }
 0x660   : > { %v1366_v44 = vsel %vm563_vm0, %v1363_v43, 0.0 }
 0x661   : > { %1367 = vadd.xlane.f32.xlu1 %v1366_v44 }
 0x6ee   : > { %v1368_v45 = vpop.xlane.xlu1 %1367 }
 0x6ef   : > { %v1370_v46 = vmul.f32 0.03125, %v1368_v45 }
 0x6f1   : > { %v1371_v47 = vsub.f32 %v1363_v43, %v1370_v46 }
 0x6f3   : > { %v1372_v48 = vmul.f32 %v1371_v47, %v1371_v47 }
 0x6f5   : > { %v1373_v49 = vsel %vm563_vm0, %v1372_v48, 0.0 }
 0x6f6   : > { %1374 = vadd.xlane.f32.xlu0 %v1373_v49 }
 0x783   : > { %v1375_v53 = vpop.xlane.xlu0 %1374 }
 0x784   : > { %v1376_v54 = vmul.f32 0.03125, %v1375_v53 }
 0x786   : > { %v1377_v55 = vadd.f32 1e-05, %v1376_v54 }
 0x788   : > { %2000 = vrsqrt.f32 %v1377_v55 }
 0x792   : > { %v2001_v56 = vpop.eup %2000 }
 0x793   : > { %v1379_v58 = vmul.f32 %v2001_v56, %v1371_v47 }
 0x795   : > { %v1386_v60 = vmul.f32 %v1713_v57, %v1379_v58 }
 0x797   : > { %v1393_v61 = vadd.f32 %v1714_v59, %v1386_v60 }
 0x799   : > { %v1394_v62 = vpack.c.bf16 %v1393_v61, %v1393_v61 }
 0x79b   : > { %1850 = vmatmul.mubr.msk.bf16.vlgmr.msra.gmra.mrb[28].mxu1 %vm563_vm0, %v1394_v62 }
 0x86e   : > { %v1455_v3 = vpop.f32.mrb[28].mxu1 }
 0x86f   : > { %v1456_v4 = vadd.f32 %v1715_v2, %v1455_v3  ;;  %v1851_v5 = vpop.f32.mrb[29].mxu1 }
 0x870   : > { %v1458_v6 = vpop.f32.mrb[30].mxu1 }
 0x871   : > { %v1461_v7 = vmax.f32 %v1456_v4, 0.0  ;;  %v1852_v9 = vpop.f32.mrb[31].mxu1 }
 0x873   : > { %v1462_v10 = vpack.c.bf16 %v1461_v7, %v1461_v7 }
 0x875   : > { %1862 = vmatmul.mubr.msk.bf16.vlgmr.msra.gmra.mrb[24].mxu0 %vm1502_vm5, %v1462_v10 }
 0x948   : > { %v1540_v11 = vpop.f32.mrb[24].mxu0 }
 0x949   : > { %v1541_v12 = vadd.f32 %v1719_v8, %v1540_v11  ;;  %v1863_v13 = vpop.f32.mrb[25].mxu0 }
 0x94a   : > { %v1543_v14 = vpop.f32.mrb[26].mxu0 }
 0x94b   : > { %v1546_v15 = vadd.f32 %v1541_v12, %v1363_v43  ;;  %v1864_v16 = vpop.f32.mrb[27].mxu0 }
 0x94d   : > { %v1547_v17 = vpack.c.bf16 %v1546_v15, %v1546_v15 }
 0x94f   : > { %1549 = vst.msk [vmem:[%s550_s27] sm:$0xf] %vm1548_vm6, %v1547_v17 }
 0x950   : > { %2127 = shalt.err (!%p2124_p6)
}
 0x951   : > { %s2128_s15 = scalar_lea.hbm %s2656_s26, 64  ;;  %s2132_s18 = scalar_lea.hbm %s2753_s16, 128 }
 0x952   : > { %p2129_p7 = scmp.ne.s32.totalorder %s2656_s26, %s2128_s15  ;;  %p2133_p0 = scmp.lt.u32.totalorder %s2656_s26, %s2753_s16 }
 0x953   : > { %p2134_p2 = scmp.lt.u32.totalorder %s2132_s18, %s2128_s15  ;;  %p2136_p1 = scmp.lt.u32.totalorder %s2128_s15, %s2656_s26 }
 0x954   : > { %p2130_p9 = pnand %p2129_p7, %p2754_p4 }
 0x955   : > { %p2135_p13 = por %p2134_p2, %p2133_p0 }
 0x956   : > { %p2131_p12 = pneg %p2130_p9 }
 0x957   : > { %p2137_p8 = por %p2136_p1, %p2135_p13 }
 0x959   : > { %p2138_p10 = pnand %p2137_p8, %p2131_p12 }
 0x95b   : > { %2141 = shalt.err (!%p2138_p10)
}
 0x95c   : > { %1881 = dma.vmem_to_hbm [thread:$0]  (%p2754_p4), %s2658_s17, 64, %s2656_s26, %s1551_s29  }
 0x95d PF: > { %s2755_s27 = sld [smem:[#allocation21_spill]]  ;;  %s2756_s25 = sld [smem:[#allocation18_spill]] }
 0x95e   : > { %s2757_s14 = sld [smem:[#allocation24_spill]] }
 0x963   : > { %p1908_p11 = scmp.ge.s32.totalorder %s2755_s27, 2  ;;  %s1577_s13 = sand.u32 1, %s2756_s25  }
 0x964   : > { %p2758_p3 = scmp.ne.s32.totalorder %s2757_s14, 0  ;;  %s1578_s21 = scalar_lea.sflag [#allocation7], %s1577_s13 }
 0x966   : > { %p1897_p5 = pnand %p1908_p11, %p2758_p3 }
 0x968   : > { %2179 = dma.done.wait (!%p1897_p5), %s1578_s21, 64  }
 0x969   : > { %2181 = vsyncadd (!%p1897_p5), %s1578_s21, 4294967232  ;;  %s31_s22 = sadd.s32 1, %s2755_s27   ;;  %s2759_s20 = sld [smem:[#allocation19_spill]] }
 0x96a   : > { %p28_p6 = scmp.ge.s32.totalorder %s31_s22, 4   ;;  %s2760_s6 = sld [smem:[#allocation25_spill]] }
 0x96b   : > { %s2761_s21 = sld [smem:[#allocation20_spill]]  ;;  %s2762_s13 = sld [smem:[#allocation22_spill]] }
 0x96c   : > { %s2763_s18 = smov %s2188_s19  ;;  %30 = sbr.rel (!%p28_p6) target bundleno = 10 (0xa), region = 147 }
 0x96f   : > { %s2764_s19 = smov %s2759_s20 }
 0x970   : > { %s2765_s20 = smov %s2760_s6 }
 0x973   :  { %1583 = vsyncpa [#allocation6], 1 }
 0x974   :  { %1585 = vsyncpa [#allocation6 + $0x1], 1 }
 0x975   :  { %1586 = vsyncpa [#allocation9], 1 }
 0x976   :  { %1587 = vsyncpa [#allocation12], 1 }
 0x977   :  { %1588 = vsyncpa [#allocation7], 1 }
 0x978   :  { %1590 = vsyncpa [#allocation7 + $0x1], 1 }

// kernel: tpu_custom_call.1
= control target key start
LH: loop header
LB: loop body
LE: loop exit
PB: predicated region body
PF: predicated region fallthrough
CT: control target
= control target key end

     0   :  { %s2703_s0 = inlined_call_operand.vmem [shape: f32[2,8,32], index: 0, kind: input, shape index: {}]   ;;  %s2704_s1 = inlined_call_operand.vmem [shape: bf16[32,96], index: 1, kind: input, shape index: {}]   ;;  %s2705_s2 = inlined_call_operand.vmem [shape: f32[1,96], index: 2, kind: input, shape index: {}]   ;;  %s2706_s3 = inlined_call_operand.vmem [shape: bf16[4,8,32], index: 3, kind: input, shape index: {}]   ;;  %s2707_s4 = inlined_call_operand.vmem [shape: f32[1,32], index: 4, kind: input, shape index: {}]   ;;  %s2708_s5 = inlined_call_operand.hbm [shape: f32[1,32], index: 5, kind: input, shape index: {}]   ;;  %s2709_s6 = inlined_call_operand.hbm [shape: f32[1,32], index: 6, kind: input, shape index: {}]   ;;  %s2710_s7 = inlined_call_operand.hbm [shape: f32[1,32], index: 7, kind: input, shape index: {}]   ;;  %s2711_s8 = inlined_call_operand.hbm [shape: f32[1,32], index: 8, kind: input, shape index: {}]   ;;  %s2712_s9 = inlined_call_operand.vmem [shape: bf16[32,64], index: 9, kind: input, shape index: {}]   ;;  %s2713_s10 = inlined_call_operand.vmem [shape: f32[1,64], index: 10, kind: input, shape index: {}]   ;;  %s2714_s11 = inlined_call_operand.vmem [shape: bf16[64,32], index: 11, kind: input, shape index: {}]   ;;  %s2715_s12 = inlined_call_operand.vmem [shape: f32[1,32], index: 12, kind: input, shape index: {}]   ;;  %s2716_s13 = inlined_call_operand.vmem [shape: f32[1,32], index: 13, kind: input, shape index: {}]   ;;  %s2717_s14 = inlined_call_operand.vmem [shape: f32[1,32], index: 14, kind: input, shape index: {}]   ;;  %s2718_s15 = inlined_call_operand.hbm [shape: bf16[2,8,32], index: 15, kind: output, shape index: {}]  }
   0x1   :  { %2733 = sst [smem:[#allocation26_spill]] %s2709_s6 }
   0x2   :  { %2734 = sst [smem:[#allocation27_spill]] %s2718_s15 }
   0x3   :  { %20 = vsyncpa [#allocation6], 0 }
   0x4   :  { %21 = vsyncpa [#allocation9], 0 }
   0x5   :  { %22 = vsyncpa [#allocation12], 0 }
   0x6   :  { %23 = vsyncpa [#allocation7], 0 }
   0x7   :  { %25 = vsyncpa [#allocation7 + $0x1], 0  ;;  %s2304_s18 = smov 0   ;;  %s2306_s19 = smov 0  }
   0x8   :  { %s2308_s20 = smov 0   ;;  %s2310_s21 = smov 0  }
   0x9   :  { %s2312_s13 = smov 0   ;;  %s2314_s22 = smov 0  }
   0xa LB: > { %2735 = sst [smem:[#allocation18_spill]] %s2184_s18  ;;  %s1678_s14 = sadd.s32 4294967295, %s2204_s22   ;;  %s2204_s22 = sphi %s2314_s22, %s31_s22   ;;  %s2200_s13 = sphi %s2312_s13, %s2762_s13   ;;  %s2196_s21 = sphi %s2310_s21, %s2761_s21   ;;  %s2192_s20 = sphi %s2308_s20, %s2765_s20   ;;  %s2188_s19 = sphi %s2306_s19, %s2764_s19   ;;  %s2184_s18 = sphi %s2304_s18, %s2763_s18  }
   0xb   : > { %2736 = sst [smem:[#allocation19_spill]] %s2192_s20  ;;  %s1679_s23 = sadd.s32 4294967294, %s2204_s22  }
   0xc   : > { %2737 = sst [smem:[#allocation20_spill]] %s2200_s13  ;;  %s43_s24 = sadd.s32 1, %s2200_s13 }
   0xd   : > { %2738 = sst [smem:[#allocation21_spill]] %s2204_s22  ;;  %s372_s25 = sadd.s32 1, %s2192_s20 }
   0xe   : > { %p45_p0 = scmp.ge.s32.totalorder %s43_s24, 2  ;;  %p382_p1 = scmp.ne.s32.totalorder %s2192_s20, %s2188_s19 }
   0xf   : > { %p383_p2 = scmp.eq.s32.totalorder %s1678_s14, 1  ;;  %p388_p3 = scmp.ne.s32.totalorder %s2188_s19, %s2184_s18 }
  0x10   : > { %s2767_s24 = smov (%p45_p0, %s43_s24), 0  ;;  %p389_p5 = scmp.eq.s32.totalorder %s1679_s23, 1 }
  0x11   : > { %2739 = sst [smem:[#allocation22_spill]] %s2767_s24  ;;  %p2344_p4 = por %p383_p2, %p382_p1 }
  0x12   : > { %s367_s27 = ssub.s32 %s2200_s13, %s2767_s24  ;;  %p1680_p6 = scmp.ge.s32.totalorder %s2204_s22, 1 }
  0x13   : > { %s2740_s26 = scalar_select %p2344_p4, 1, 0 }
  0x14   : > { %p370_p7 = scmp.eq.s32.totalorder %s367_s27, 0  ;;  %p2351_p8 = por %p389_p5, %p388_p3 }
  0x15   : > { %2741 = sst [smem:[#allocation23_spill]] %s2740_s26  ;;  %p396_p9 = scmp.lt.s32.totalorder %s2204_s22, 3 }
  0x16   : > { %s2742_s28 = scalar_select %p2351_p8, 1, 0 }
  0x17   : > { %s2357_s29 = scalar_select %p370_p7, %s2192_s20, %s372_s25  }
  0x18   : > { %2743 = sst [smem:[#allocation24_spill]] %s2742_s28  ;;  %p2359_p10 = pnand %p1680_p6, %p396_p9 }
  0x19   : > { %2744 = sst [smem:[#allocation25_spill]] %s2357_s29  ;;  %p2363_p11 = scmp.eq.s32.totalorder %s1678_s14, 0 }
  0x1a   : > { %s2745_s30 = scalar_select %p2359_p10, 1, 0 }
  0x1b   : > { %s2746_s16 = scalar_select %p2363_p11, 1, 0 }
  0x1c   : > { %p1883_p12 = pneg %p2359_p10  ;;  %s2206_s17 = smov [#allocation8]  }
  0x1d   : > { %s432_s23 = sshll.u32 %s2206_s17, 4  ;;  %s2207_s25 = smov [#allocation5]   ;;  %s433_s23 = int_to_ptr.vmem [resolvable:$true] %s432_s23 }
  0x1e   : > { %p2371_p13 = pnand %p2363_p11, %p1883_p12  ;;  %s421_s24 = sshll.u32 %s2207_s25, 4  ;;  %s2375_s24 = int_to_ptr.vmem [resolvable:$true] %s421_s24 }
  0x1f   : > { %s2748_s6 = sld [smem:[#allocation26_spill]] }
  0x20   : > { %p2385_p1 = pneg %p2371_p13 }
  0x25   : > { %s2002_s29 = scalar_lea.hbm %s2748_s6, 16 }
  0x26   : > { %p2003_p0 = scmp.ne.s32.totalorder %s2748_s6, %s2002_s29  ;;  %p2009_p5 = scmp.lt.u32.totalorder %s2002_s29, %s2748_s6 }
  0x28   : > { %p2005_p2 = pnand %p2385_p1, %p2003_p0 }
  0x2a   : > { %p2006_p3 = pneg %p2005_p2 }
  0x2c   : > { %p2011_p6 = pnand %p2009_p5, %p2006_p3 }
  0x2e   : > { %2014 = shalt.err (!%p2011_p6)
}
  0x2f   : > { %s2015_s13 = scalar_lea.vmem %s433_s23, 16  ;;  %s2022_s20 = scalar_lea.vmem %s433_s23, 32 }
  0x30   : > { %p2016_p7 = scmp.ne.s32.totalorder %s433_s23, %s2015_s13  ;;  %p2023_p8 = scmp.lt.s32.totalorder %s433_s23, %s433_s23 }
  0x31   : > { %p2024_p4 = scmp.lt.s32.totalorder %s2022_s20, %s2015_s13 }
  0x32   : > { %p2018_p9 = pnand %p2016_p7, %p2385_p1 }
  0x33   : > { %p2025_p11 = por %p2024_p4, %p2023_p8 }
  0x34   : > { %p2019_p12 = pneg %p2018_p9 }
  0x36   : > { %p2026_p10 = pnand %p2025_p11, %p2019_p12 }
  0x38   : > { %2029 = shalt.err (!%p2026_p10)
}
  0x39   : > { %1889 = dma.hbm_to_vmem [thread:$0]  (!%p2371_p13), %s2748_s6, 16, %s433_s23, [#allocation9]  }
  0x3a   : > { %s2030_s25 = scalar_lea.hbm %s2708_s5, 16 }
  0x3b   : > { %p2031_p0 = scmp.ne.s32.totalorder %s2708_s5, %s2030_s25  ;;  %p2037_p8 = scmp.lt.u32.totalorder %s2030_s25, %s2708_s5 }
  0x3d   : > { %p2033_p2 = pnand %p2031_p0, %p2385_p1 }
  0x3f   : > { %p2034_p4 = pneg %p2033_p2 }
  0x41   : > { %p2039_p10 = pnand %p2037_p8, %p2034_p4 }
  0x43   : > { %2042 = shalt.err (!%p2039_p10)
}
  0x44   : > { %s2043_s23 = scalar_lea.vmem %s2375_s24, 16  ;;  %s2050_s15 = scalar_lea.vmem %s2375_s24, 32 }
  0x45   : > { %p2044_p11 = scmp.ne.s32.totalorder %s2375_s24, %s2043_s23  ;;  %p2051_p6 = scmp.lt.s32.totalorder %s2375_s24, %s2375_s24 }
  0x46   : > { %p2052_p7 = scmp.lt.s32.totalorder %s2050_s15, %s2043_s23 }
  0x47   : > { %p2046_p3 = pnand %p2044_p11, %p2385_p1 }
  0x48   : > { %p2053_p9 = por %p2052_p7, %p2051_p6 }
  0x49   : > { %p2047_p5 = pneg %p2046_p3 }
  0x4b   : > { %p2054_p12 = pnand %p2053_p9, %p2047_p5 }
  0x4d   : > { %2057 = shalt.err (!%p2054_p12)
}
  0x4e   : > { %1886 = dma.hbm_to_vmem [thread:$0]  (!%p2371_p13), %s2708_s5, 16, %s2375_s24, [#allocation6]  }
  0x4f   : > { %s2208_s14 = smov [#allocation10]   ;;  %s2209_s29 = smov [#allocation11]  }
  0x50   : > { %s443_s18 = sshll.u32 %s2208_s14, 4  ;;  %s454_s25 = sshll.u32 %s2209_s29, 4  ;;  %s444_s18 = int_to_ptr.vmem [resolvable:$true] %s443_s18  ;;  %s455_s25 = int_to_ptr.vmem [resolvable:$true] %s454_s25 }
  0x51   : > { %s2058_s23 = scalar_lea.hbm %s2710_s7, 16 }
  0x52   : > { %p2059_p0 = scmp.ne.s32.totalorder %s2710_s7, %s2058_s23  ;;  %p2065_p8 = scmp.lt.u32.totalorder %s2058_s23, %s2710_s7 }
  0x54   : > { %p2061_p2 = pnand %p2059_p0, %p2385_p1 }
  0x56   : > { %p2062_p4 = pneg %p2061_p2 }
  0x58   : > { %p2067_p10 = pnand %p2065_p8, %p2062_p4 }
  0x5a   : > { %2070 = shalt.err (!%p2067_p10)
}
  0x5b   : > { %s2071_s24 = scalar_lea.vmem %s444_s18, 16  ;;  %s2078_s28 = scalar_lea.vmem %s444_s18, 32 }
  0x5c   : > { %p2072_p11 = scmp.ne.s32.totalorder %s444_s18, %s2071_s24  ;;  %p2079_p6 = scmp.lt.s32.totalorder %s444_s18, %s444_s18 }
  0x5d   : > { %p2080_p7 = scmp.lt.s32.totalorder %s2078_s28, %s2071_s24 }
  0x5e   : > { %p2074_p3 = pnand %p2072_p11, %p2385_p1 }
  0x5f   : > { %p2081_p9 = por %p2080_p7, %p2079_p6 }
  0x60   : > { %p2075_p5 = pneg %p2074_p3 }
  0x62   : > { %p2082_p12 = pnand %p2081_p9, %p2075_p5 }
  0x64   : > { %2085 = shalt.err (!%p2082_p12)
}
  0x65   : > { %1892 = dma.hbm_to_vmem [thread:$0]  (!%p2371_p13), %s2710_s7, 16, %s444_s18, [#allocation9]  }
  0x66   : > { %s2086_s13 = scalar_lea.hbm %s2711_s8, 16 }
  0x67   : > { %p2087_p0 = scmp.ne.s32.totalorder %s2711_s8, %s2086_s13  ;;  %p2093_p8 = scmp.lt.u32.totalorder %s2086_s13, %s2711_s8 }
  0x69   : > { %p2089_p2 = pnand %p2087_p0, %p2385_p1 }
  0x6b   : > { %p2090_p4 = pneg %p2089_p2 }
  0x6d   : > { %p2095_p10 = pnand %p2093_p8, %p2090_p4 }
  0x6f   : > { %2098 = shalt.err (!%p2095_p10)
}
  0x70   : > { %s2099_s24 = scalar_lea.vmem %s455_s25, 16  ;;  %s2106_s18 = scalar_lea.vmem %s455_s25, 32 }
  0x71   : > { %p2100_p11 = scmp.ne.s32.totalorder %s455_s25, %s2099_s24  ;;  %p2107_p6 = scmp.lt.s32.totalorder %s455_s25, %s455_s25 }
  0x72   : > { %p2108_p7 = scmp.lt.s32.totalorder %s2106_s18, %s2099_s24 }
  0x73   : > { %p2102_p3 = pnand %p2100_p11, %p2385_p1 }
  0x74   : > { %p2109_p9 = por %p2108_p7, %p2107_p6 }
  0x75   : > { %p2103_p5 = pneg %p2102_p3 }
  0x77   : > { %p2110_p12 = pnand %p2109_p9, %p2103_p5 }
  0x79   : > { %2113 = shalt.err (!%p2110_p12)
}
  0x7a   : > { %1895 = dma.hbm_to_vmem [thread:$0]  (!%p2371_p13), %s2711_s8, 16, %s455_s25, [#allocation12]  }
  0x7b   : > { %p2750_p0 = scmp.ne.s32.totalorder %s2745_s30, 0 }
  0x7c   : > { %p2751_p2 = scmp.ne.s32.totalorder (!%p2750_p0), %s2746_s16, 0 }
  0x7d   : > { %492 = sbr.rel (%p2750_p0) target bundleno = 2397 (0x95d), region = 80 }
  0x84   : > { %2167 = dma.done.wait (%p2751_p2), [#allocation6], 16  }
  0x85   : > { %2169 = vsyncadd (%p2751_p2), [#allocation6], 4294967280 }
  0x86   : > { %2171 = dma.done.wait (%p2751_p2), [#allocation9], 32  }
  0x87   : > { %2173 = vsyncadd (%p2751_p2), [#allocation9], 4294967264 }
  0x88   : > { %2175 = dma.done.wait (%p2751_p2), [#allocation12], 16  }
  0x89   : > { %2177 = vsyncadd (%p2751_p2), [#allocation12], 4294967280  ;;  %p551_p13 = scmp.lt.s32.totalorder %s2196_s21, 1  ;;  %vm563_vm0 = vcmask 261120   ;;  %v1974_v7 = vld [vmem:[%s2704_s1] sm:$0xff]   ;;  %v2210_v8 = vmov 0.0  }
  0x8a   : > { %1765 = vmatprep.subr.bf16.mxu1 %v2210_v8  ;;  %vm2211_vm1 = vmmov 0   ;;  %v1975_v9 = vld [vmem:[%s2704_s1 + $0x8] sm:$0xff]   ;;  %1779 = vmatprep.subr.bf16.mxu0 %v2210_v8  ;;  %v1693_v14 = vld [vmem:[#allocation5] ss:$0 sm:$0xff]  ;;  %v1694_v16 = vld [vmem:[#allocation8] ss:$0 sm:$0xff] }
  0x8b   : > { %s552_s30 = scalar_select %p551_p13, %s2196_s21, 1  ;;  %1769 = vmatprep.mubr.msk.bf16.mxu1 %vm2211_vm1, %v2210_v8  ;;  %1766 = vmatpush3.bf16.msra.mxu1 %v1974_v7  ;;  %v1695_v20 = vld [vmem:[%s2705_s2] ss:$0 sm:$0xff]  ;;  %vm660_vm2 = vcmask 60416   ;;  %vm733_vm3 = vcmask 64512   ;;  %vm965_vm4 = vcmask 1043456  }
  0x8c   : > { %1767 = vmatprep.subr.bf16.mxu1 %v2210_v8  ;;  %1781 = vmatprep.mubr.msk.bf16.mxu0 %vm2211_vm1, %v2210_v8  ;;  %s2212_s15 = smov 80   ;;  %s2213_s22 = smov 96   ;;  %vm1502_vm5 = vcmask 523264   ;;  %vm1548_vm6 = vcmask 257024  }
  0x8d   : > { %s1692_s27 = sshll.u32 %s552_s30, 3  ;;  %s2214_s24 = smov 88  }
  0x8e   : > { %s554_s14 = scalar_lea.vmem %s2703_s0, %s1692_s27  ;;  %s2215_s18 = smov 120  }
  0x8f   : > { %v2480_v0 = vld [vmem:[%s554_s14] sm:$0xff]  ;;  %1768 = vmatpush3.bf16.msra.mxu1 %v1975_v9  ;;  %s2216_s28 = smov 72   ;;  %s2217_s6 = smov 112  }
  0x90   : > { %v564_v1 = vsel %vm563_vm0, %v2480_v0, 0.0  ;;  %1773 = vmatprep.subr.bf16.mxu1 %v2210_v8  ;;  %s2218_s30 = smov 104   ;;  %s2219_s27 = smov 64  }
  0x91   : > { %565 = vadd.xlane.f32.xlu0 %v564_v1  ;;  %s2220_s17 = smov 48   ;;  %s2221_s25 = smov 40  }
  0x92   : > { %s2222_s14 = smov 56   ;;  %s2753_s16 = sld [smem:[#allocation27_spill]] }
 0x11e   : > { %v566_v2 = vpop.xlane.xlu0 %565 }
 0x11f   : > { %v568_v3 = vmul.f32 0.03125, %v566_v2 }
 0x121   : > { %v569_v4 = vsub.f32 %v2480_v0, %v568_v3 }
 0x123   : > { %v570_v5 = vmul.f32 %v569_v4, %v569_v4 }
 0x125   : > { %v571_v6 = vsel %vm563_vm0, %v570_v5, 0.0 }
 0x126   : > { %572 = vadd.xlane.f32.xlu0 %v571_v6 }
 0x1b3   : > { %v573_v10 = vpop.xlane.xlu0 %572 }
 0x1b4   : > { %v574_v11 = vmul.f32 0.03125, %v573_v10 }
 0x1b6   : > { %v575_v12 = vadd.f32 1e-05, %v574_v11 }
 0x1b8   : > { %1982 = vrsqrt.f32 %v575_v12 }
 0x1c2   : > { %v1983_v13 = vpop.eup %1982 }
 0x1c3   : > { %v577_v15 = vmul.f32 %v1983_v13, %v569_v4 }
 0x1c5   : > { %v584_v17 = vmul.f32 %v1693_v14, %v577_v15 }
 0x1c7   : > { %v591_v18 = vadd.f32 %v1694_v16, %v584_v17 }
 0x1c9   : > { %v592_v19 = vpack.c.bf16 %v591_v18, %v591_v18 }
 0x1cb   : > { %1770 = vmatmul.mubr.msk.bf16.vlgmr.msra.gmra.mrb[0].mxu1 %vm563_vm0, %v592_v19 }
 0x1cc   : > { %1775 = vmatprep.mubr.msk.bf16.mxu1 %vm2211_vm1, %v2210_v8 }
 0x29e   : > { %v653_v21 = vpop.f32.mrb[0].mxu1 }
 0x29f   : > { %v654_v22 = vadd.f32 %v1695_v20, %v653_v21  ;;  %v1771_v23 = vpop.f32.mrb[1].mxu1 }
 0x2a0   : > { %v656_v24 = vpop.f32.mrb[2].mxu1 }
 0x2a1   : > { %v2506_v25 = vpack.c.bf16 %v654_v22, %v654_v22  ;;  %v1772_v26 = vpop.f32.mrb[3].mxu1 }
 0x2a3   : > { %693 = vrot.lane.b32.xlu0 %v2506_v25, %s2212_s15  ;;  %665 = vrot.lane.b32.xlu1 %v2506_v25, %s2213_s22  ;;  %661 = vst.msk [vmem:[#allocation2] sm:$0xf] %vm660_vm2, %v2506_v25  ;;  %s548_s22 = sand.u32 1, %s2188_s19  }
 0x2a4   : > { %s1551_s29 = scalar_lea.sflag [#allocation7], %s548_s22 }
 0x2a7   : > { %678 = vrot.lane.b32.xlu1 %v2506_v25, %s2214_s24  ;;  %s1691_s24 = sshll.u32 %s548_s22, 2 }
 0x2aa   : > { %v725_v38 = vld [vmem:[#allocation2] sm:$0xf] }
 0x2ab   : > { %673 = vrot.lane.b32.xlu1 %v2506_v25, %s2215_s18 }
 0x2af   : > { %708 = vrot.lane.b32.xlu1 %v2506_v25, %s2216_s28 }
 0x2b3   : > { %688 = vrot.lane.b32.xlu1 %v2506_v25, %s2217_s6  ;;  %s2752_s6 = sld [smem:[#allocation23_spill]] }
 0x2b7   : > { %703 = vrot.lane.b32.xlu1 %v2506_v25, %s2218_s30  ;;  %s1726_s30 = sshll.u32 %s2196_s21, 6  ;;  %s2223_s21 = smov [#allocation13]  }
 0x2b8   : > { %s2656_s26 = scalar_lea.hbm %s2753_s16, %s1726_s30  ;;  %s2118_s20 = sshll.u32 %s2223_s21, 4  ;;  %s2119_s20 = int_to_ptr.vmem [resolvable:$false] %s2118_s20 }
 0x2b9   : > { %p2754_p4 = scmp.ne.s32.totalorder %s2752_s6, 0  ;;  %s2120_s23 = scalar_lea.vmem %s2119_s20, 128 }
 0x2bb   : > { %669 = vrot.lane.b32.xlu1 %v2506_v25, %s2219_s27  ;;  %s550_s27 = scalar_lea.vmem [#allocation13], %s1691_s24 }
 0x315   : > { %v694_v27 = vpop.permute.xlu0 %693  ;;  %v666_v28 = vpop.permute.xlu1 %665 }
 0x316   : > { %697 = vst.msk [vmem:[#allocation3 + $0x8] sm:$0xf] %vm660_vm2, %v694_v27  ;;  %668 = vst.msk [vmem:[#allocation3] sm:$0xf] %vm660_vm2, %v666_v28 }
 0x319   : > { %v679_v29 = vpop.permute.xlu1 %678 }
 0x31a   : > { %682 = vst.msk [vmem:[#allocation3 + $0x4] sm:$0xf] %vm660_vm2, %v679_v29 }
 0x31d   : > { %v674_v30 = vpop.permute.xlu1 %673  ;;  %v729_v31 = vld [vmem:[#allocation3] sm:$0xf]  ;;  %v731_v36 = vld [vmem:[#allocation3 + $0x8] sm:$0xf] }
 0x31e   : > { %677 = vst.msk [vmem:[#allocation2 + $0x4] sm:$0xf] %vm660_vm2, %v674_v30  ;;  %v738_v32 = vsel %vm733_vm3, %v729_v31, 0  ;;  %v830_v39 = vsel %vm733_vm3, %v731_v36, 0 }
 0x31f   : > { %1774 = vmatpush3.bf16.xpose.msra.mxu1 %v738_v32 }
 0x320   : > { %1785 = vmatprep.subr.bf16.mxu1 %v2210_v8 }
 0x321   : > { %v709_v33 = vpop.permute.xlu1 %708  ;;  %v730_v34 = vld [vmem:[#allocation3 + $0x4] sm:$0xf] }
 0x322   : > { %712 = vst.msk [vmem:[#allocation3 + $0xc] sm:$0xf] %vm660_vm2, %v709_v33  ;;  %v784_v35 = vsel %vm733_vm3, %v730_v34, 0 }
 0x323   : > { %1780 = vmatpush3.bf16.xpose.msra.mxu0 %v784_v35 }
 0x324   : > { %1791 = vmatprep.subr.bf16.mxu0 %v2210_v8 }
 0x325   : > { %v689_v37 = vpop.permute.xlu1 %688  ;;  %v726_v41 = vld [vmem:[#allocation2 + $0x4] sm:$0xf] }
 0x326   : > { %692 = vst.msk [vmem:[#allocation2 + $0x8] sm:$0xf] %vm660_vm2, %v689_v37  ;;  %1776 = vmatmul.mubr.msk.bf16.vlgmr.msra.gmra.mrb[4].mxu1 %vm733_vm3, %v725_v38 }
 0x327   : > { %1786 = vmatpush3.bf16.xpose.msra.mxu1 %v830_v39  ;;  %1787 = vmatprep.mubr.msk.bf16.mxu1 %vm2211_vm1, %v2210_v8 }
 0x328   : > { %1797 = vmatprep.subr.bf16.mxu1 %v2210_v8 }
 0x329   : > { %v704_v40 = vpop.permute.xlu1 %703  ;;  %v732_v42 = vld [vmem:[#allocation3 + $0xc] sm:$0xf] }
 0x32a   : > { %707 = vst.msk [vmem:[#allocation2 + $0xc] sm:$0xf] %vm660_vm2, %v704_v40  ;;  %1782 = vmatmul.mubr.msk.bf16.vlgmr.msra.gmra.mrb[0].mxu0 %vm733_vm3, %v726_v41  ;;  %v876_v43 = vsel %vm733_vm3, %v732_v42, 0  ;;  %v1159_v40 = vld [vmem:[%s2706_s3] sm:$0xf] }
 0x32b   : > { %1792 = vmatpush3.bf16.xpose.msra.mxu0 %v876_v43  ;;  %1793 = vmatprep.mubr.msk.bf16.mxu0 %vm2211_vm1, %v2210_v8  ;;  %v1167_v41 = vsel %vm965_vm4, %v1159_v40, 0  ;;  %v1160_v42 = vld [vmem:[%s2706_s3 + $0x4] sm:$0xf] }
 0x32c   : > { %1803 = vmatprep.subr.bf16.mxu0 %v2210_v8  ;;  %v1213_v43 = vsel %vm965_vm4, %v1160_v42, 0 }
 0x32d   : > { %v670_v44 = vpop.permute.xlu1 %669  ;;  %v727_v45 = vld [vmem:[#allocation2 + $0x8] sm:$0xf] }
 0x32e   : > { %672 = vst.msk [vmem:[#allocation4] sm:$0xf] %vm660_vm2, %v670_v44  ;;  %1788 = vmatmul.mubr.msk.bf16.vlgmr.msra.gmra.mrb[8].mxu1 %vm733_vm3, %v727_v45 }
 0x32f   : > { %1799 = vmatprep.mubr.msk.bf16.mxu1 %vm2211_vm1, %v2210_v8 }
 0x331   : > { %v728_v46 = vld [vmem:[#allocation2 + $0xc] sm:$0xf] }
 0x332   : > { %1794 = vmatmul.mubr.msk.bf16.vlgmr.msra.gmra.mrb[4].mxu0 %vm733_vm3, %v728_v46 }
 0x333   : > { %1805 = vmatprep.mubr.msk.bf16.mxu0 %vm2211_vm1, %v2210_v8 }
 0x335   : > { %v958_v47 = vld [vmem:[#allocation4] sm:$0xf] }
 0x336   : > { %v967_v48 = vsel %vm965_vm4, %v958_v47, 0 }
 0x337   : > { %1798 = vmatpush3.bf16.msra.mxu1 %v967_v48 }
 0x338   : > { %1809 = vmatprep.subr.bf16.mxu1 %v2210_v8 }
 0x3f9   : > { %v774_v49 = vpop.f32.mrb[4].mxu1 }
 0x3fa   : > { %v1777_v50 = vpop.f32.mrb[5].mxu1  ;;  %v918_v51 = vsel %vm733_vm3, %v774_v49, -inf }
 0x3fb   : > { %919 = vmax.xlane.f32.xlu1 %v918_v51  ;;  %v777_v52 = vpop.f32.mrb[6].mxu1 }
 0x3fc   : > { %v1778_v53 = vpop.f32.mrb[7].mxu1 }
 0x3fd   : > { %v820_v54 = vpop.f32.mrb[0].mxu0 }
 0x3fe   : > { %v1783_v55 = vpop.f32.mrb[1].mxu0  ;;  %v921_v56 = vsel %vm733_vm3, %v820_v54, -inf }
 0x3ff   : > { %922 = vmax.xlane.f32.xlu0 %v921_v56  ;;  %v823_v57 = vpop.f32.mrb[2].mxu0 }
 0x400   : > { %v1784_v58 = vpop.f32.mrb[3].mxu0 }
 0x401   : > { %v866_v59 = vpop.f32.mrb[8].mxu1 }
 0x402   : > { %v1789_v60 = vpop.f32.mrb[9].mxu1  ;;  %v924_v61 = vsel %vm733_vm3, %v866_v59, -inf }
 0x403   : > { %925 = vmax.xlane.f32.xlu1 %v924_v61  ;;  %v869_v62 = vpop.f32.mrb[10].mxu1 }
 0x404   : > { %v1790_v63 = vpop.f32.mrb[11].mxu1 }
 0x405   : > { %v912_v1 = vpop.f32.mrb[4].mxu0 }
 0x406   : > { %v1795_v2 = vpop.f32.mrb[5].mxu0  ;;  %v927_v3 = vsel %vm733_vm3, %v912_v1, -inf }
 0x407   : > { %928 = vmax.xlane.f32.xlu0 %v927_v3  ;;  %v915_v4 = vpop.f32.mrb[6].mxu0  ;;  %v1162_v3 = vld [vmem:[%s2706_s3 + $0xc] sm:$0xf] }
 0x408   : > { %v1796_v5 = vpop.f32.mrb[7].mxu0 }
 0x414   : > { %698 = vrot.lane.b32.xlu1 %v2506_v25, %s2220_s17  ;;  %s1565_s17 = sshll.u32 %s550_s27, 4  ;;  %s2658_s17 = int_to_ptr.vmem [resolvable:$true] %s1565_s17 }
 0x415   : > { %s2114_s13 = scalar_lea.vmem %s2658_s17, 64  ;;  %p2121_p11 = scmp.lt.s32.totalorder %s2658_s17, %s2119_s20 }
 0x416   : > { %p2115_p1 = scmp.ne.s32.totalorder %s2658_s17, %s2114_s13  ;;  %p2122_p3 = scmp.lt.s32.totalorder %s2120_s23, %s2114_s13 }
 0x418   : > { %713 = vrot.lane.b32.xlu1 %v2506_v25, %s2221_s25  ;;  %p2116_p8 = pnand %p2115_p1, %p2754_p4  ;;  %p2123_p5 = por %p2122_p3, %p2121_p11 }
 0x41a   : > { %p2117_p10 = pneg %p2116_p8 }
 0x41c   : > { %p2124_p6 = pnand %p2123_p5, %p2117_p10 }
 0x41d   : > { %683 = vrot.lane.b32.xlu0 %v2506_v25, %s2222_s14 }
 0x488   : > { %v920_v6 = vpop.xlane.xlu1 %919 }
 0x489   : > { %v930_v7 = vsub.f32 %v774_v49, %v920_v6  ;;  %v1161_v49 = vld [vmem:[%s2706_s3 + $0x8] sm:$0xf] }
 0x48a   : > { %v1259_v55 = vsel %vm965_vm4, %v1161_v49, 0 }
 0x48b   : > { %v934_v9 = vmul.f32 1.442695, %v930_v7 }
 0x48c   : > { %v923_v10 = vpop.xlane.xlu0 %922 }
 0x48d   : > { %1984 = vpow2.f32 %v934_v9  ;;  %v931_v11 = vsub.f32 %v820_v54, %v923_v10  ;;  %v1305_v10 = vsel %vm965_vm4, %v1162_v3, 0 }
 0x48f   : > { %v936_v12 = vmul.f32 1.442695, %v931_v11 }
 0x490   : > { %v926_v13 = vpop.xlane.xlu1 %925 }
 0x491   : > { %1986 = vpow2.f32 %v936_v12  ;;  %v932_v14 = vsub.f32 %v866_v59, %v926_v13 }
 0x493   : > { %v938_v15 = vmul.f32 1.442695, %v932_v14 }
 0x494   : > { %v929_v16 = vpop.xlane.xlu0 %928  ;;  %v699_v17 = vpop.permute.xlu1 %698 }
 0x495   : > { %1988 = vpow2.f32 %v938_v15  ;;  %v933_v18 = vsub.f32 %v912_v1, %v929_v16  ;;  %702 = vst.msk [vmem:[#allocation4 + $0x8] sm:$0xf] %vm660_vm2, %v699_v17 }
 0x497   : > { %v1985_v19 = vpop.eup %1984  ;;  %v940_v20 = vmul.f32 1.442695, %v933_v18 }
 0x498   : > { %v684_v21 = vpop.permute.xlu0 %683  ;;  %v714_v22 = vpop.permute.xlu1 %713  ;;  %v942_v23 = vsel %vm733_vm3, %v1985_v19, 0.0  ;;  %v954_v24 = vpack.c.bf16 %v1985_v19, %v1985_v19 }
 0x499   : > { %1990 = vpow2.f32 %v940_v20  ;;  %687 = vst.msk [vmem:[#allocation4 + $0x4] sm:$0xf] %vm660_vm2, %v684_v21  ;;  %717 = vst.msk [vmem:[#allocation4 + $0xc] sm:$0xf] %vm660_vm2, %v714_v22  ;;  %943 = vadd.xlane.f32.xlu0 %v942_v23 }
 0x49a   : > { %1800 = vmatmul.mubr.msk.bf16.vlgmr.msra.gmra.mrb[12].mxu1 %vm733_vm3, %v954_v24 }
 0x49b   : > { %v1987_v25 = vpop.eup %1986  ;;  %1811 = vmatprep.mubr.msk.bf16.mxu1 %vm2211_vm1, %v2210_v8 }
 0x49c   : > { %v945_v26 = vsel %vm733_vm3, %v1987_v25, 0.0  ;;  %v960_v27 = vld [vmem:[#allocation4 + $0x8] sm:$0xf]  ;;  %v955_v36 = vpack.c.bf16 %v1987_v25, %v1987_v25 }
 0x49d   : > { %946 = vadd.xlane.f32.xlu1 %v945_v26  ;;  %v1059_v28 = vsel %vm965_vm4, %v960_v27, 0 }
 0x49e   : > { %1810 = vmatpush3.bf16.msra.mxu1 %v1059_v28 }
 0x49f   : > { %v1989_v29 = vpop.eup %1988  ;;  %1821 = vmatprep.subr.bf16.mxu1 %v2210_v8 }
 0x4a0   : > { %v948_v30 = vsel %vm733_vm3, %v1989_v29, 0.0  ;;  %v959_v31 = vld [vmem:[#allocation4 + $0x4] sm:$0xf]  ;;  %v956_v32 = vpack.c.bf16 %v1989_v29, %v1989_v29  ;;  %v961_v34 = vld [vmem:[#allocation4 + $0xc] sm:$0xf] }
 0x4a1   : > { %949 = vadd.xlane.f32.xlu0 %v948_v30  ;;  %v1013_v33 = vsel %vm965_vm4, %v959_v31, 0  ;;  %v1105_v38 = vsel %vm965_vm4, %v961_v34, 0 }
 0x4a2   : > { %1804 = vmatpush3.bf16.msra.mxu0 %v1013_v33  ;;  %1812 = vmatmul.mubr.msk.bf16.vlgmr.msra.gmra.mrb[16].mxu1 %vm733_vm3, %v956_v32 }
 0x4a3   : > { %v1991_v35 = vpop.eup %1990  ;;  %1815 = vmatprep.subr.bf16.mxu0 %v2210_v8  ;;  %1823 = vmatprep.mubr.msk.bf16.mxu1 %vm2211_vm1, %v2210_v8 }
 0x4a4   : > { %v951_v37 = vsel %vm733_vm3, %v1991_v35, 0.0  ;;  %v957_v39 = vpack.c.bf16 %v1991_v35, %v1991_v35  ;;  %1822 = vmatpush3.bf16.msra.mxu1 %v1167_v41 }
 0x4a5   : > { %1806 = vmatmul.mubr.msk.bf16.vlgmr.msra.gmra.mrb[8].mxu0 %vm733_vm3, %v955_v36  ;;  %952 = vadd.xlane.f32.xlu0 %v951_v37  ;;  %v1712_v37 = vld [vmem:[%s2707_s4] ss:$0 sm:$0xff] }
 0x4a6   : > { %1816 = vmatpush3.bf16.msra.mxu0 %v1105_v38  ;;  %1817 = vmatprep.mubr.msk.bf16.mxu0 %vm2211_vm1, %v2210_v8 }
 0x4a7   : > { %1827 = vmatprep.subr.bf16.mxu0 %v2210_v8  ;;  %1833 = vmatprep.subr.bf16.mxu1 %v2210_v8 }
 0x4ad   : > { %1818 = vmatmul.mubr.msk.bf16.vlgmr.msra.gmra.mrb[12].mxu0 %vm733_vm3, %v957_v39 }
 0x4ae   : > { %1829 = vmatprep.mubr.msk.bf16.mxu0 %vm2211_vm1, %v2210_v8  ;;  %1828 = vmatpush3.bf16.msra.mxu0 %v1213_v43 }
 0x4af   : > { %1839 = vmatprep.subr.bf16.mxu0 %v2210_v8 }
 0x526   : > { %v944_v44 = vpop.xlane.xlu0 %943 }
 0x527   : > { %1992 = vrcp.f32 %v944_v44 }
 0x52a   : > { %v947_v46 = vpop.xlane.xlu1 %946 }
 0x52e   : > { %v950_v45 = vpop.xlane.xlu0 %949 }
 0x52f   : > { %1994 = vrcp.f32 %v950_v45 }
 0x530   : > { %1996 = vrcp.f32 %v947_v46 }
 0x531   : > { %v1993_v47 = vpop.eup %1992 }
 0x532   : > { %v953_v56 = vpop.xlane.xlu0 %952 }
 0x533   : > { %1998 = vrcp.f32 %v953_v56 }
 0x539   : > { %v1995_v57 = vpop.eup %1994 }
 0x53a   : > { %v1997_v62 = vpop.eup %1996 }
 0x53d   : > { %v1999_v11 = vpop.eup %1998 }
 0x56d   : > { %v1003_v48 = vpop.f32.mrb[12].mxu1 }
 0x56e   : > { %v1151_v50 = vmul.f32 %v1993_v47, %v1003_v48  ;;  %v1801_v51 = vpop.f32.mrb[13].mxu1 }
 0x56f   : > { %v1006_v52 = vpop.f32.mrb[14].mxu1  ;;  %v1978_v51 = vld [vmem:[%s2714_s11] sm:$0xff]  }
 0x570   : > { %v1155_v53 = vpack.c.bf16 %v1151_v50, %v1151_v50  ;;  %v1802_v54 = vpop.f32.mrb[15].mxu1  ;;  %v1976_v50 = vld [vmem:[%s2712_s9] sm:$0xff]   ;;  %v1979_v52 = vld [vmem:[%s2714_s11 + $0x8] sm:$0xff]  }
 0x572   : > { %1824 = vmatmul.mubr.msk.bf16.vlgmr.msra.gmra.mrb[20].mxu1 %vm733_vm3, %v1155_v53 }
 0x573   : > { %1834 = vmatpush3.bf16.msra.mxu1 %v1259_v55  ;;  %1835 = vmatprep.mubr.msk.bf16.mxu1 %vm2211_vm1, %v2210_v8 }
 0x574   : > { %1845 = vmatprep.subr.bf16.mxu1 %v2210_v8 }
 0x575   : > { %v1095_v58 = vpop.f32.mrb[16].mxu1 }
 0x576   : > { %v1153_v59 = vmul.f32 %v1995_v57, %v1095_v58  ;;  %v1813_v60 = vpop.f32.mrb[17].mxu1  ;;  %v1713_v57 = vld [vmem:[#allocation10] ss:$0 sm:$0xff] }
 0x577   : > { %v1098_v61 = vpop.f32.mrb[18].mxu1 }
 0x578   : > { %v1157_v63 = vpack.c.bf16 %v1153_v59, %v1153_v59  ;;  %v1049_v1 = vpop.f32.mrb[8].mxu0  ;;  %v1814_v2 = vpop.f32.mrb[19].mxu1  ;;  %v1714_v59 = vld [vmem:[#allocation11] ss:$0 sm:$0xff] }
 0x579   : > { %v1152_v4 = vmul.f32 %v1997_v62, %v1049_v1  ;;  %v1807_v5 = vpop.f32.mrb[9].mxu0  ;;  %v1981_v1 = vld [vmem:[%s2714_s11 + $0x18] sm:$0xff]   ;;  %v1715_v2 = vld [vmem:[%s2713_s10] ss:$0 sm:$0xff] }
 0x57a   : > { %v1052_v6 = vpop.f32.mrb[10].mxu0  ;;  %1836 = vmatmul.mubr.msk.bf16.vlgmr.msra.gmra.mrb[24].mxu1 %vm733_vm3, %v1157_v63  ;;  %v1980_v63 = vld [vmem:[%s2714_s11 + $0x10] sm:$0xff]  }
 0x57b   : > { %v1156_v7 = vpack.c.bf16 %v1152_v4, %v1152_v4  ;;  %v1808_v9 = vpop.f32.mrb[11].mxu0  ;;  %1849 = vmatprep.mubr.msk.bf16.mxu1 %vm2211_vm1, %v2210_v8  ;;  %1846 = vmatpush3.bf16.msra.mxu1 %v1976_v50 }
 0x57c   : > { %1847 = vmatprep.subr.bf16.mxu1 %v2210_v8 }
 0x57d   : > { %1830 = vmatmul.mubr.msk.bf16.vlgmr.msra.gmra.mrb[16].mxu0 %vm733_vm3, %v1156_v7 }
 0x57e   : > { %1840 = vmatpush3.bf16.msra.mxu0 %v1305_v10  ;;  %1841 = vmatprep.mubr.msk.bf16.mxu0 %vm2211_vm1, %v2210_v8 }
 0x57f   : > { %1853 = vmatprep.subr.bf16.mxu0 %v2210_v8 }
 0x580   : > { %v1141_v12 = vpop.f32.mrb[12].mxu0 }
 0x581   : > { %v1154_v13 = vmul.f32 %v1999_v11, %v1141_v12  ;;  %v1819_v14 = vpop.f32.mrb[13].mxu0 }
 0x582   : > { %v1144_v15 = vpop.f32.mrb[14].mxu0 }
 0x583   : > { %v1158_v16 = vpack.c.bf16 %v1154_v13, %v1154_v13  ;;  %v1820_v17 = vpop.f32.mrb[15].mxu0 }
 0x585   : > { %1842 = vmatmul.mubr.msk.bf16.vlgmr.msra.gmra.mrb[20].mxu0 %vm733_vm3, %v1158_v16 }
 0x586   : > { %1861 = vmatprep.mubr.msk.bf16.mxu0 %vm2211_vm1, %v2210_v8  ;;  %1854 = vmatpush3.bf16.msra.mxu0 %v1978_v51 }
 0x587   : > { %1855 = vmatprep.subr.bf16.mxu0 %v2210_v8 }
 0x58a   : > { %1856 = vmatpush3.bf16.msra.mxu0 %v1979_v52 }
 0x58b   : > { %1857 = vmatprep.subr.bf16.mxu0 %v2210_v8 }
 0x58e   : > { %1858 = vmatpush3.bf16.msra.mxu0 %v1980_v63 }
 0x58f   : > { %1859 = vmatprep.subr.bf16.mxu0 %v2210_v8  ;;  %v1719_v8 = vld [vmem:[%s2715_s12] ss:$0 sm:$0xff] }
 0x592   : > { %1860 = vmatpush3.bf16.msra.mxu0 %v1981_v1 }
 0x645   : > { %v1203_v18 = vpop.f32.mrb[20].mxu1 }
 0x646   : > { %v1825_v19 = vpop.f32.mrb[21].mxu1  ;;  %v1348_v27 = vsel %vm563_vm0, %v1203_v18, 0.0 }
 0x647   : > { %v1206_v20 = vpop.f32.mrb[22].mxu1 }
 0x648   : > { %v1826_v21 = vpop.f32.mrb[23].mxu1 }
 0x64d   : > { %v1295_v22 = vpop.f32.mrb[24].mxu1 }
 0x64e   : > { %v1837_v23 = vpop.f32.mrb[25].mxu1  ;;  %v1351_v32 = vsel %vm563_vm0, %v1295_v22, 0.0 }
 0x64f   : > { %v1298_v24 = vpop.f32.mrb[26].mxu1 }
 0x650   : > { %v1249_v25 = vpop.f32.mrb[16].mxu0  ;;  %v1838_v26 = vpop.f32.mrb[27].mxu1 }
 0x651   : > { %v1349_v28 = vsel %vm563_vm0, %v1249_v25, 0.0  ;;  %v1831_v29 = vpop.f32.mrb[17].mxu0 }
 0x652   : > { %v1350_v30 = vadd.f32 %v1349_v28, %v1348_v27  ;;  %v1252_v31 = vpop.f32.mrb[18].mxu0 }
 0x653   : > { %v1832_v33 = vpop.f32.mrb[19].mxu0 }
 0x654   : > { %v1352_v34 = vadd.f32 %v1351_v32, %v1350_v30 }
 0x658   : > { %v1341_v35 = vpop.f32.mrb[20].mxu0 }
 0x659   : > { %v1353_v36 = vsel %vm563_vm0, %v1341_v35, 0.0  ;;  %v1843_v38 = vpop.f32.mrb[21].mxu0 }
 0x65a   : > { %v1354_v39 = vadd.f32 %v1353_v36, %v1352_v34  ;;  %v1344_v40 = vpop.f32.mrb[22].mxu0 }
 0x65b   : > { %v1844_v41 = vpop.f32.mrb[23].mxu0 }
 0x65c   : > { %v1362_v42 = vadd.f32 %v1712_v37, %v1354_v39 }
 0x65e   : > { %v1363_v43 = vadd.f32 %v1362_v42, %v2480_v0  ;;  %v1977_v0 = vld [vmem:[%s2712_s9 + $0x8] sm:$0xff]  }
 0x65f   : > { %1848 = vmatpush3.bf16.msra.mxu1 %v1977_v0 }
 0x660   : > { %v1366_v44 = vsel %vm563_vm0, %v1363_v43, 0.0 }
 0x661   : > { %1367 = vadd.xlane.f32.xlu1 %v1366_v44 }
 0x6ee   : > { %v1368_v45 = vpop.xlane.xlu1 %1367 }
 0x6ef   : > { %v1370_v46 = vmul.f32 0.03125, %v1368_v45 }
 0x6f1   : > { %v1371_v47 = vsub.f32 %v1363_v43, %v1370_v46 }
 0x6f3   : > { %v1372_v48 = vmul.f32 %v1371_v47, %v1371_v47 }
 0x6f5   : > { %v1373_v49 = vsel %vm563_vm0, %v1372_v48, 0.0 }
 0x6f6   : > { %1374 = vadd.xlane.f32.xlu0 %v1373_v49 }
 0x783   : > { %v1375_v53 = vpop.xlane.xlu0 %1374 }
 0x784   : > { %v1376_v54 = vmul.f32 0.03125, %v1375_v53 }
 0x786   : > { %v1377_v55 = vadd.f32 1e-05, %v1376_v54 }
 0x788   : > { %2000 = vrsqrt.f32 %v1377_v55 }
 0x792   : > { %v2001_v56 = vpop.eup %2000 }
 0x793   : > { %v1379_v58 = vmul.f32 %v2001_v56, %v1371_v47 }
 0x795   : > { %v1386_v60 = vmul.f32 %v1713_v57, %v1379_v58 }
 0x797   : > { %v1393_v61 = vadd.f32 %v1714_v59, %v1386_v60 }
 0x799   : > { %v1394_v62 = vpack.c.bf16 %v1393_v61, %v1393_v61 }
 0x79b   : > { %1850 = vmatmul.mubr.msk.bf16.vlgmr.msra.gmra.mrb[28].mxu1 %vm563_vm0, %v1394_v62 }
 0x86e   : > { %v1455_v3 = vpop.f32.mrb[28].mxu1 }
 0x86f   : > { %v1456_v4 = vadd.f32 %v1715_v2, %v1455_v3  ;;  %v1851_v5 = vpop.f32.mrb[29].mxu1 }
 0x870   : > { %v1458_v6 = vpop.f32.mrb[30].mxu1 }
 0x871   : > { %v1461_v7 = vmax.f32 %v1456_v4, 0.0  ;;  %v1852_v9 = vpop.f32.mrb[31].mxu1 }
 0x873   : > { %v1462_v10 = vpack.c.bf16 %v1461_v7, %v1461_v7 }
 0x875   : > { %1862 = vmatmul.mubr.msk.bf16.vlgmr.msra.gmra.mrb[24].mxu0 %vm1502_vm5, %v1462_v10 }
 0x948   : > { %v1540_v11 = vpop.f32.mrb[24].mxu0 }
 0x949   : > { %v1541_v12 = vadd.f32 %v1719_v8, %v1540_v11  ;;  %v1863_v13 = vpop.f32.mrb[25].mxu0 }
 0x94a   : > { %v1543_v14 = vpop.f32.mrb[26].mxu0 }
 0x94b   : > { %v1546_v15 = vadd.f32 %v1541_v12, %v1363_v43  ;;  %v1864_v16 = vpop.f32.mrb[27].mxu0 }
 0x94d   : > { %v1547_v17 = vpack.c.bf16 %v1546_v15, %v1546_v15 }
 0x94f   : > { %1549 = vst.msk [vmem:[%s550_s27] sm:$0xf] %vm1548_vm6, %v1547_v17 }
 0x950   : > { %2127 = shalt.err (!%p2124_p6)
}
 0x951   : > { %s2128_s15 = scalar_lea.hbm %s2656_s26, 64  ;;  %s2132_s18 = scalar_lea.hbm %s2753_s16, 128 }
 0x952   : > { %p2129_p7 = scmp.ne.s32.totalorder %s2656_s26, %s2128_s15  ;;  %p2133_p0 = scmp.lt.u32.totalorder %s2656_s26, %s2753_s16 }
 0x953   : > { %p2134_p2 = scmp.lt.u32.totalorder %s2132_s18, %s2128_s15  ;;  %p2136_p1 = scmp.lt.u32.totalorder %s2128_s15, %s2656_s26 }
 0x954   : > { %p2130_p9 = pnand %p2129_p7, %p2754_p4 }
 0x955   : > { %p2135_p13 = por %p2134_p2, %p2133_p0 }
 0x956   : > { %p2131_p12 = pneg %p2130_p9 }
 0x957   : > { %p2137_p8 = por %p2136_p1, %p2135_p13 }
 0x959   : > { %p2138_p10 = pnand %p2137_p8, %p2131_p12 }
 0x95b   : > { %2141 = shalt.err (!%p2138_p10)
}
 0x95c   : > { %1881 = dma.vmem_to_hbm [thread:$0]  (%p2754_p4), %s2658_s17, 64, %s2656_s26, %s1551_s29  }
 0x95d PF: > { %s2755_s27 = sld [smem:[#allocation21_spill]]  ;;  %s2756_s25 = sld [smem:[#allocation18_spill]] }
 0x95e   : > { %s2757_s14 = sld [smem:[#allocation24_spill]] }
 0x963   : > { %p1908_p11 = scmp.ge.s32.totalorder %s2755_s27, 2  ;;  %s1577_s13 = sand.u32 1, %s2756_s25  }
 0x964   : > { %p2758_p3 = scmp.ne.s32.totalorder %s2757_s14, 0  ;;  %s1578_s21 = scalar_lea.sflag [#allocation7], %s1577_s13 }
 0x966   : > { %p1897_p5 = pnand %p1908_p11, %p2758_p3 }
 0x968   : > { %2179 = dma.done.wait (!%p1897_p5), %s1578_s21, 64  }
 0x969   : > { %2181 = vsyncadd (!%p1897_p5), %s1578_s21, 4294967232  ;;  %s31_s22 = sadd.s32 1, %s2755_s27   ;;  %s2759_s20 = sld [smem:[#allocation19_spill]] }
 0x96a   : > { %p28_p6 = scmp.ge.s32.totalorder %s31_s22, 4   ;;  %s2760_s6 = sld [smem:[#allocation25_spill]] }
 0x96b   : > { %s2761_s21 = sld [smem:[#allocation20_spill]]  ;;  %s2762_s13 = sld [smem:[#allocation22_spill]] }
 0x96c   : > { %s2763_s18 = smov %s2188_s19  ;;  %30 = sbr.rel (!%p28_p6) target bundleno = 10 (0xa), region = 147 }
 0x96f   : > { %s2764_s19 = smov %s2759_s20 }
 0x970   : > { %s2765_s20 = smov %s2760_s6 }
 0x973   :  { %1583 = vsyncpa [#allocation6], 1 }
 0x974   :  { %1585 = vsyncpa [#allocation6 + $0x1], 1 }
 0x975   :  { %1586 = vsyncpa [#allocation9], 1 }
 0x976   :  { %1587 = vsyncpa [#allocation12], 1 }
 0x977   :  { %1588 = vsyncpa [#allocation7], 1 }
 0x978   :  { %1590 = vsyncpa [#allocation7 + $0x1], 1 }

</bundles_post_ra>
